<compile_context>
chip_gen: v6e
topology: v6e:2x2x1
jax: 0.10.0
libtpu: 0.0.40
codegen_flags: <defaults>
</compile_context>

<pallas_src>
from functools import partial

import jax
import jax.numpy as jnp
from jax.experimental import pallas as pl
from jax.experimental.pallas import tpu as pltpu


# ----------------------------------------------------------------------------
# Fused kernel: in-kernel embedding gather + 2-layer LSTM (layer-major) + batched
# FC + log_softmax.  PyTorch gate order: [i, f, g, o].
# ----------------------------------------------------------------------------
def fused_lstm_kernel(T, B, ids_ref, ep_ref, whh0_ref, wih1_ref, whh1_ref,
                      b1_ref, fcw_ref, fcb_ref, out_ref):
    H = whh0_ref.shape[0]
    H4 = whh0_ref.shape[1]

    # Resident operands — loaded once, everything fits trivially in VMEM (<100 KB).
    w_hh0 = whh0_ref[...]        # (H, 4H) bf16
    w_ih1 = wih1_ref[...]        # (H, 4H) bf16
    w_hh1 = whh1_ref[...]        # (H, 4H) bf16
    b1 = b1_ref[...]             # (1, 4H) f32   (= b_ih1 + b_hh1)
    fc_w = fcw_ref[...]          # (H, O)  bf16
    fc_b = fcb_ref[...]          # (1, O)  f32

    # Lane mask selecting the g-gate block [2H, 3H) of the (B, 4H) gates vreg.
    # Computed once and reused (broadcast is not CSE'd by JAX).
    lane = jax.lax.broadcasted_iota(jnp.int32, (B, H4), 1)
    g_mask = (lane >= 2 * H) & (lane < 3 * H)

    def lstm_update(gates, c):
        # Full-vreg nonlinearities: sigmoid/tanh over all 4H lanes, select the g block.
        sig = jax.nn.sigmoid(gates)
        th = jnp.tanh(gates)
        act = jnp.where(g_mask, th, sig)
        i_g = act[:, 0 * H:1 * H]
        f_g = act[:, 1 * H:2 * H]
        g_g = act[:, 2 * H:3 * H]
        o_g = act[:, 3 * H:4 * H]
        c_new = f_g * c + i_g * g_g
        h_new = o_g * jnp.tanh(c_new)
        return h_new, c_new

    # ---- Layer-0 input contribution: in-kernel gather of the pre-projected embedding
    # table (rows already equal x_t @ W_ih0^T + b0); token ids read from SMEM.
    xw0 = []
    for t in range(T):
        rows = [ep_ref[pl.ds(ids_ref[t * B + b], 1), :] for b in range(B)]
        xw0.append(jnp.concatenate(rows, axis=0))           # (B, 4H) f32

    zeros = jnp.zeros((B, H), jnp.float32)

    # ---- Layer 0 recurrence (all T steps, statically unrolled).
    h0, c0 = zeros, zeros
    h0_all = []
    for t in range(T):
        gates = xw0[t]
        if t > 0:                                            # h0 == 0 at t == 0
            gates = gates + jnp.dot(h0.astype(w_hh0.dtype), w_hh0,
                                    preferred_element_type=jnp.float32)
        h0, c0 = lstm_update(gates, c0)
        h0_all.append(h0)

    # ---- Layer 1: batched input-side matmul over all timesteps, then recurrence.
    # TODO(synk): training-mode inter-layer dropout (p=0.5) omitted (inference).
    h0_stack = jnp.concatenate(h0_all, axis=0)               # (T*B, H) f32, t-major
    xw1 = jnp.dot(h0_stack.astype(w_ih1.dtype), w_ih1,
                  preferred_element_type=jnp.float32) + b1   # (T*B, 4H) f32
    h1, c1 = zeros, zeros
    h1_all = []
    for t in range(T):
        gates = xw1[t * B:(t + 1) * B, :]
        if t > 0:
            gates = gates + jnp.dot(h1.astype(w_hh1.dtype), w_hh1,
                                    preferred_element_type=jnp.float32)
        h1, c1 = lstm_update(gates, c1)
        h1_all.append(h1)

    # ---- Batched FC + log_softmax, single output store.
    h1_stack = jnp.concatenate(h1_all, axis=0)               # (T*B, H) f32
    logits = jnp.dot(h1_stack.astype(fc_w.dtype), fc_w,
                     preferred_element_type=jnp.float32) + fc_b   # (T*B, O)
    m = jnp.max(logits, axis=1, keepdims=True)
    shifted = logits - m
    lse = jnp.log(jnp.sum(jnp.exp(shifted), axis=1, keepdims=True))
    out_ref[...] = shifted - lse                             # one store


def fused_forward(ids, emb_proj, whh0, wih1, whh1, b1, fc_w, fc_b, *, T, B):
    """ids: (T*B,) int32 token ids (t-major, batch padded). Returns (T*B, O) log-probs."""
    V, H4 = emb_proj.shape
    H = whh0.shape[0]
    O = fc_w.shape[1]
    return pl.pallas_call(
        partial(fused_lstm_kernel, T, B),
        out_shape=jax.ShapeDtypeStruct((T * B, O), jnp.float32),
        grid_spec=pltpu.PrefetchScalarGridSpec(
            num_scalar_prefetch=1,                 # ids -> SMEM, passed to index_maps
            grid=(1,),
            in_specs=[
                pl.BlockSpec((V, H4), lambda i, ids: (0, 0)),   # emb_proj (resident)
                pl.BlockSpec((H, H4), lambda i, ids: (0, 0)),   # W_hh0
                pl.BlockSpec((H, H4), lambda i, ids: (0, 0)),   # W_ih1
                pl.BlockSpec((H, H4), lambda i, ids: (0, 0)),   # W_hh1
                pl.BlockSpec((1, H4), lambda i, ids: (0, 0)),   # b1
                pl.BlockSpec((H, O), lambda i, ids: (0, 0)),    # fc_w
                pl.BlockSpec((1, O), lambda i, ids: (0, 0)),    # fc_b
            ],
            out_specs=pl.BlockSpec((T * B, O), lambda i, ids: (0, 0)),
        ),
        compiler_params=pltpu.CompilerParams(dimension_semantics=("arbitrary",)),
    )(ids, emb_proj, whh0, wih1, whh1, b1, fc_w, fc_b)


# ----------------------------------------------------------------------------
# Parameters (torch layout) and one-time packing into kernel-friendly layout.
# ----------------------------------------------------------------------------
def init_params(key, vocab_size, embed_size, hidden_size, output_size):
    ks = jax.random.split(key, 11)
    s = 0.1
    H = hidden_size
    return {
        "embedding": jax.random.normal(ks[0], (vocab_size, embed_size), jnp.float32) * s,
        "w_ih0": jax.random.normal(ks[1], (4 * H, embed_size), jnp.float32) * s,
        "w_hh0": jax.random.normal(ks[2], (4 * H, H), jnp.float32) * s,
        "b_ih0": jax.random.normal(ks[3], (4 * H,), jnp.float32) * s,
        "b_hh0": jax.random.normal(ks[4], (4 * H,), jnp.float32) * s,
        "w_ih1": jax.random.normal(ks[5], (4 * H, H), jnp.float32) * s,
        "w_hh1": jax.random.normal(ks[6], (4 * H, H), jnp.float32) * s,
        "b_ih1": jax.random.normal(ks[7], (4 * H,), jnp.float32) * s,
        "b_hh1": jax.random.normal(ks[8], (4 * H,), jnp.float32) * s,
        "fc_w": jax.random.normal(ks[9], (output_size, H), jnp.float32) * s,
        "fc_b": jax.random.normal(ks[10], (output_size,), jnp.float32) * s,
    }


def pack_params(raw, matmul_dtype=jnp.bfloat16):
    """One-time pre-transpose / fold / dtype-cast of the weights (done at init)."""
    H4 = raw["w_ih0"].shape[0]
    V = raw["embedding"].shape[0]
    V_pad = ((V + 7) // 8) * 8
    # Fold embedding lookup + layer-0 input projection + layer-0 bias into one table
    # (computed once, in f32): emb_proj[v] = embedding[v] @ W_ih0^T + (b_ih0 + b_hh0).
    emb_proj = (raw["embedding"] @ raw["w_ih0"].T
                + (raw["b_ih0"] + raw["b_hh0"])[None, :]).astype(jnp.float32)
    emb_proj = jnp.pad(emb_proj, ((0, V_pad - V), (0, 0)))    # sublane-align vocab rows
    return {
        "emb_proj": emb_proj,                                  # (V_pad, 4H) f32
        "whh0": raw["w_hh0"].T.astype(matmul_dtype),           # (H, 4H)
        "wih1": raw["w_ih1"].T.astype(matmul_dtype),           # (H, 4H)
        "whh1": raw["w_hh1"].T.astype(matmul_dtype),           # (H, 4H)
        "b1": (raw["b_ih1"] + raw["b_hh1"]).reshape(1, H4).astype(jnp.float32),
        "fc_w": raw["fc_w"].T.astype(matmul_dtype),            # (H, O)
        "fc_b": raw["fc_b"].reshape(1, -1).astype(jnp.float32),
    }


# ----------------------------------------------------------------------------
# Full model forward (only id padding / final tiny reorder are plain-JAX glue).
# ----------------------------------------------------------------------------
@jax.jit
def simple_lstm_forward(packed, sentence):
    B, T = sentence.shape
    O = packed["fc_w"].shape[1]
    B_pad = ((B + 7) // 8) * 8                       # pad batch to the 8-sublane width
    sent_tm = sentence.T.astype(jnp.int32)           # (T, B) time-major
    if B_pad != B:
        sent_tm = jnp.pad(sent_tm, ((0, 0), (0, B_pad - B)))   # padded rows -> token 0
    ids = sent_tm.reshape(T * B_pad)
    out = fused_forward(ids, packed["emb_proj"], packed["whh0"], packed["wih1"],
                        packed["whh1"], packed["b1"], packed["fc_w"], packed["fc_b"],
                        T=T, B=B_pad)                # (T*B_pad, O), t-major
    out = out.reshape(T, B_pad, O)[:, :B, :]         # drop padded batch rows
    return jnp.transpose(out, (1, 0, 2)).reshape(B * T, O)   # batch-major (torch order)


# Pure-JAX reference with identical math/dtypes (for correctness check).
def reference_forward(packed, sentence):
    B, T = sentence.shape
    H = packed["whh0"].shape[0]
    xw0 = jnp.take(packed["emb_proj"], sentence, axis=0)       # (B, T, 4H), bias folded

    def cell(inp, h, c, whh):
        gates = inp + jnp.dot(h.astype(whh.dtype), whh, preferred_element_type=jnp.float32)
        i_g = jax.nn.sigmoid(gates[:, :H])
        f_g = jax.nn.sigmoid(gates[:, H:2 * H])
        g_g = jnp.tanh(gates[:, 2 * H:3 * H])
        o_g = jax.nn.sigmoid(gates[:, 3 * H:])
        c = f_g * c + i_g * g_g
        return o_g * jnp.tanh(c), c

    h0 = c0 = h1 = c1 = jnp.zeros((B, H), jnp.float32)
    outs = []
    for t in range(T):
        h0, c0 = cell(xw0[:, t, :], h0, c0, packed["whh0"])
        inp1 = jnp.dot(h0.astype(packed["wih1"].dtype), packed["wih1"],
                       preferred_element_type=jnp.float32) + packed["b1"]
        h1, c1 = cell(inp1, h1, c1, packed["whh1"])
        outs.append(h1)
    hs = jnp.stack(outs, axis=1).reshape(B * T, H)
    logits = jnp.dot(hs.astype(packed["fc_w"].dtype), packed["fc_w"],
                     preferred_element_type=jnp.float32) + packed["fc_b"]
    return jax.nn.log_softmax(logits, axis=1)


if __name__ == "__main__":
    vocab_size, embed_size, hidden_size, output_size = 50, 16, 32, 10
    B, T = 2, 8

    key = jax.random.PRNGKey(0)
    pkey, dkey = jax.random.split(key)
    params = pack_params(init_params(pkey, vocab_size, embed_size, hidden_size, output_size))
    sentence = jax.random.randint(dkey, (B, T), 0, vocab_size, dtype=jnp.int32)

    out = jax.block_until_ready(simple_lstm_forward(params, sentence))

    assert out.shape == (B * T, output_size), out.shape
    # log_softmax rows should (approximately) sum to 1 after exp
    assert jnp.allclose(jnp.sum(jnp.exp(out), axis=1), 1.0, atol=1e-4)
    # match the pure-JAX reference (same bf16 matmul / f32 gate math)
    ref = reference_forward(params, sentence)
    assert jnp.allclose(out, ref, atol=1e-3, rtol=1e-3), float(jnp.max(jnp.abs(out - ref)))
    print("KERNEL_OK")
</pallas_src>

<mosaic_0001>
module attributes {stable_mosaic.version = 11 : i64} {
  func.func @fused_lstm_kernel(%arg0: i32, %arg1: memref<64xi32, #tpu.memory_space<smem>>, %arg2: memref<56x128xf32, #tpu.memory_space<vmem>>, %arg3: memref<32x128xbf16, #tpu.memory_space<vmem>>, %arg4: memref<32x128xbf16, #tpu.memory_space<vmem>>, %arg5: memref<32x128xbf16, #tpu.memory_space<vmem>>, %arg6: memref<1x128xf32, #tpu.memory_space<vmem>>, %arg7: memref<32x10xbf16, #tpu.memory_space<vmem>>, %arg8: memref<1x10xf32, #tpu.memory_space<vmem>>, %arg9: memref<64x10xf32, #tpu.memory_space<vmem>>) attributes {dimension_semantics = [#tpu.dimension_semantics<arbitrary>], iteration_bounds = array<i64: 1>, scalar_prefetch = 1 : i64, scratch_operands = 0 : i64, tpu.core_type = #tpu.core_type<tc>, window_params = [{pipeline_mode = #tpu.pipeline_mode<synchronous>, transform_indices = @transform_0, window_bounds = array<i64: 56, 128>}, {pipeline_mode = #tpu.pipeline_mode<synchronous>, transform_indices = @transform_1, window_bounds = array<i64: 32, 128>}, {pipeline_mode = #tpu.pipeline_mode<synchronous>, transform_indices = @transform_2, window_bounds = array<i64: 32, 128>}, {pipeline_mode = #tpu.pipeline_mode<synchronous>, transform_indices = @transform_3, window_bounds = array<i64: 32, 128>}, {pipeline_mode = #tpu.pipeline_mode<synchronous>, transform_indices = @transform_4, window_bounds = array<i64: 1, 128>}, {pipeline_mode = #tpu.pipeline_mode<synchronous>, transform_indices = @transform_5, window_bounds = array<i64: 32, 10>}, {pipeline_mode = #tpu.pipeline_mode<synchronous>, transform_indices = @transform_6, window_bounds = array<i64: 1, 10>}, {pipeline_mode = #tpu.pipeline_mode<synchronous>, transform_indices = @transform_7, window_bounds = array<i64: 64, 10>}]} {
    %c0 = arith.constant 0 : index
    %c0_0 = arith.constant 0 : index
    %0 = vector.load %arg3[%c0, %c0_0] : memref<32x128xbf16, #tpu.memory_space<vmem>>, vector<32x128xbf16>
    %c0_1 = arith.constant 0 : index
    %c0_2 = arith.constant 0 : index
    %1 = vector.load %arg4[%c0_1, %c0_2] : memref<32x128xbf16, #tpu.memory_space<vmem>>, vector<32x128xbf16>
    %c0_3 = arith.constant 0 : index
    %c0_4 = arith.constant 0 : index
    %2 = vector.load %arg5[%c0_3, %c0_4] : memref<32x128xbf16, #tpu.memory_space<vmem>>, vector<32x128xbf16>
    %c0_5 = arith.constant 0 : index
    %c0_6 = arith.constant 0 : index
    %3 = vector.load %arg6[%c0_5, %c0_6] : memref<1x128xf32, #tpu.memory_space<vmem>>, vector<1x128xf32>
    %c0_7 = arith.constant 0 : index
    %c0_8 = arith.constant 0 : index
    %4 = vector.load %arg7[%c0_7, %c0_8] : memref<32x10xbf16, #tpu.memory_space<vmem>>, vector<32x10xbf16>
    %c0_9 = arith.constant 0 : index
    %c0_10 = arith.constant 0 : index
    %5 = vector.load %arg8[%c0_9, %c0_10] : memref<1x10xf32, #tpu.memory_space<vmem>>, vector<1x10xf32>
    %6 = tpu.iota {dimensions = array<i32: 1>} : vector<8x128xi32>
    %c64_i32 = arith.constant 64 : i32
    %7 = vector.broadcast %c64_i32 : i32 to vector<8x128xi32>
    %8 = arith.cmpi sge, %6, %7 : vector<8x128xi32>
    %c96_i32 = arith.constant 96 : i32
    %9 = vector.broadcast %c96_i32 : i32 to vector<8x128xi32>
    %10 = arith.cmpi slt, %6, %9 : vector<8x128xi32>
    %11 = arith.andi %8, %10 : vector<8x128xi1>
    %c0_11 = arith.constant 0 : index
    %12 = memref.load %arg1[%c0_11] : memref<64xi32, #tpu.memory_space<smem>>
    %13 = arith.index_cast %12 : i32 to index
    %c0_12 = arith.constant 0 : index
    %14 = vector.load %arg2[%13, %c0_12] : memref<56x128xf32, #tpu.memory_space<vmem>>, vector<1x128xf32>
    %c1 = arith.constant 1 : index
    %15 = memref.load %arg1[%c1] : memref<64xi32, #tpu.memory_space<smem>>
    %16 = arith.index_cast %15 : i32 to index
    %c0_13 = arith.constant 0 : index
    %17 = vector.load %arg2[%16, %c0_13] : memref<56x128xf32, #tpu.memory_space<vmem>>, vector<1x128xf32>
    %c2 = arith.constant 2 : index
    %18 = memref.load %arg1[%c2] : memref<64xi32, #tpu.memory_space<smem>>
    %19 = arith.index_cast %18 : i32 to index
    %c0_14 = arith.constant 0 : index
    %20 = vector.load %arg2[%19, %c0_14] : memref<56x128xf32, #tpu.memory_space<vmem>>, vector<1x128xf32>
    %c3 = arith.constant 3 : index
    %21 = memref.load %arg1[%c3] : memref<64xi32, #tpu.memory_space<smem>>
    %22 = arith.index_cast %21 : i32 to index
    %c0_15 = arith.constant 0 : index
    %23 = vector.load %arg2[%22, %c0_15] : memref<56x128xf32, #tpu.memory_space<vmem>>, vector<1x128xf32>
    %c4 = arith.constant 4 : index
    %24 = memref.load %arg1[%c4] : memref<64xi32, #tpu.memory_space<smem>>
    %25 = arith.index_cast %24 : i32 to index
    %c0_16 = arith.constant 0 : index
    %26 = vector.load %arg2[%25, %c0_16] : memref<56x128xf32, #tpu.memory_space<vmem>>, vector<1x128xf32>
    %c5 = arith.constant 5 : index
    %27 = memref.load %arg1[%c5] : memref<64xi32, #tpu.memory_space<smem>>
    %28 = arith.index_cast %27 : i32 to index
    %c0_17 = arith.constant 0 : index
    %29 = vector.load %arg2[%28, %c0_17] : memref<56x128xf32, #tpu.memory_space<vmem>>, vector<1x128xf32>
    %c6 = arith.constant 6 : index
    %30 = memref.load %arg1[%c6] : memref<64xi32, #tpu.memory_space<smem>>
    %31 = arith.index_cast %30 : i32 to index
    %c0_18 = arith.constant 0 : index
    %32 = vector.load %arg2[%31, %c0_18] : memref<56x128xf32, #tpu.memory_space<vmem>>, vector<1x128xf32>
    %c7 = arith.constant 7 : index
    %33 = memref.load %arg1[%c7] : memref<64xi32, #tpu.memory_space<smem>>
    %34 = arith.index_cast %33 : i32 to index
    %c0_19 = arith.constant 0 : index
    %35 = vector.load %arg2[%34, %c0_19] : memref<56x128xf32, #tpu.memory_space<vmem>>, vector<1x128xf32>
    %36 = tpu.concatenate %14, %17, %20, %23, %26, %29, %32, %35 in 0 : vector<1x128xf32>, vector<1x128xf32>, vector<1x128xf32>, vector<1x128xf32>, vector<1x128xf32>, vector<1x128xf32>, vector<1x128xf32>, vector<1x128xf32> -> vector<8x128xf32>
    %c8 = arith.constant 8 : index
    %37 = memref.load %arg1[%c8] : memref<64xi32, #tpu.memory_space<smem>>
    %38 = arith.index_cast %37 : i32 to index
    %c0_20 = arith.constant 0 : index
    %39 = vector.load %arg2[%38, %c0_20] : memref<56x128xf32, #tpu.memory_space<vmem>>, vector<1x128xf32>
    %c9 = arith.constant 9 : index
    %40 = memref.load %arg1[%c9] : memref<64xi32, #tpu.memory_space<smem>>
    %41 = arith.index_cast %40 : i32 to index
    %c0_21 = arith.constant 0 : index
    %42 = vector.load %arg2[%41, %c0_21] : memref<56x128xf32, #tpu.memory_space<vmem>>, vector<1x128xf32>
    %c10 = arith.constant 10 : index
    %43 = memref.load %arg1[%c10] : memref<64xi32, #tpu.memory_space<smem>>
    %44 = arith.index_cast %43 : i32 to index
    %c0_22 = arith.constant 0 : index
    %45 = vector.load %arg2[%44, %c0_22] : memref<56x128xf32, #tpu.memory_space<vmem>>, vector<1x128xf32>
    %c11 = arith.constant 11 : index
    %46 = memref.load %arg1[%c11] : memref<64xi32, #tpu.memory_space<smem>>
    %47 = arith.index_cast %46 : i32 to index
    %c0_23 = arith.constant 0 : index
    %48 = vector.load %arg2[%47, %c0_23] : memref<56x128xf32, #tpu.memory_space<vmem>>, vector<1x128xf32>
    %c12 = arith.constant 12 : index
    %49 = memref.load %arg1[%c12] : memref<64xi32, #tpu.memory_space<smem>>
    %50 = arith.index_cast %49 : i32 to index
    %c0_24 = arith.constant 0 : index
    %51 = vector.load %arg2[%50, %c0_24] : memref<56x128xf32, #tpu.memory_space<vmem>>, vector<1x128xf32>
    %c13 = arith.constant 13 : index
    %52 = memref.load %arg1[%c13] : memref<64xi32, #tpu.memory_space<smem>>
    %53 = arith.index_cast %52 : i32 to index
    %c0_25 = arith.constant 0 : index
    %54 = vector.load %arg2[%53, %c0_25] : memref<56x128xf32, #tpu.memory_space<vmem>>, vector<1x128xf32>
    %c14 = arith.constant 14 : index
    %55 = memref.load %arg1[%c14] : memref<64xi32, #tpu.memory_space<smem>>
    %56 = arith.index_cast %55 : i32 to index
    %c0_26 = arith.constant 0 : index
    %57 = vector.load %arg2[%56, %c0_26] : memref<56x128xf32, #tpu.memory_space<vmem>>, vector<1x128xf32>
    %c15 = arith.constant 15 : index
    %58 = memref.load %arg1[%c15] : memref<64xi32, #tpu.memory_space<smem>>
    %59 = arith.index_cast %58 : i32 to index
    %c0_27 = arith.constant 0 : index
    %60 = vector.load %arg2[%59, %c0_27] : memref<56x128xf32, #tpu.memory_space<vmem>>, vector<1x128xf32>
    %61 = tpu.concatenate %39, %42, %45, %48, %51, %54, %57, %60 in 0 : vector<1x128xf32>, vector<1x128xf32>, vector<1x128xf32>, vector<1x128xf32>, vector<1x128xf32>, vector<1x128xf32>, vector<1x128xf32>, vector<1x128xf32> -> vector<8x128xf32>
    %c16 = arith.constant 16 : index
    %62 = memref.load %arg1[%c16] : memref<64xi32, #tpu.memory_space<smem>>
    %63 = arith.index_cast %62 : i32 to index
    %c0_28 = arith.constant 0 : index
    %64 = vector.load %arg2[%63, %c0_28] : memref<56x128xf32, #tpu.memory_space<vmem>>, vector<1x128xf32>
    %c17 = arith.constant 17 : index
    %65 = memref.load %arg1[%c17] : memref<64xi32, #tpu.memory_space<smem>>
    %66 = arith.index_cast %65 : i32 to index
    %c0_29 = arith.constant 0 : index
    %67 = vector.load %arg2[%66, %c0_29] : memref<56x128xf32, #tpu.memory_space<vmem>>, vector<1x128xf32>
    %c18 = arith.constant 18 : index
    %68 = memref.load %arg1[%c18] : memref<64xi32, #tpu.memory_space<smem>>
    %69 = arith.index_cast %68 : i32 to index
    %c0_30 = arith.constant 0 : index
    %70 = vector.load %arg2[%69, %c0_30] : memref<56x128xf32, #tpu.memory_space<vmem>>, vector<1x128xf32>
    %c19 = arith.constant 19 : index
    %71 = memref.load %arg1[%c19] : memref<64xi32, #tpu.memory_space<smem>>
    %72 = arith.index_cast %71 : i32 to index
    %c0_31 = arith.constant 0 : index
    %73 = vector.load %arg2[%72, %c0_31] : memref<56x128xf32, #tpu.memory_space<vmem>>, vector<1x128xf32>
    %c20 = arith.constant 20 : index
    %74 = memref.load %arg1[%c20] : memref<64xi32, #tpu.memory_space<smem>>
    %75 = arith.index_cast %74 : i32 to index
    %c0_32 = arith.constant 0 : index
    %76 = vector.load %arg2[%75, %c0_32] : memref<56x128xf32, #tpu.memory_space<vmem>>, vector<1x128xf32>
    %c21 = arith.constant 21 : index
    %77 = memref.load %arg1[%c21] : memref<64xi32, #tpu.memory_space<smem>>
    %78 = arith.index_cast %77 : i32 to index
    %c0_33 = arith.constant 0 : index
    %79 = vector.load %arg2[%78, %c0_33] : memref<56x128xf32, #tpu.memory_space<vmem>>, vector<1x128xf32>
    %c22 = arith.constant 22 : index
    %80 = memref.load %arg1[%c22] : memref<64xi32, #tpu.memory_space<smem>>
    %81 = arith.index_cast %80 : i32 to index
    %c0_34 = arith.constant 0 : index
    %82 = vector.load %arg2[%81, %c0_34] : memref<56x128xf32, #tpu.memory_space<vmem>>, vector<1x128xf32>
    %c23 = arith.constant 23 : index
    %83 = memref.load %arg1[%c23] : memref<64xi32, #tpu.memory_space<smem>>
    %84 = arith.index_cast %83 : i32 to index
    %c0_35 = arith.constant 0 : index
    %85 = vector.load %arg2[%84, %c0_35] : memref<56x128xf32, #tpu.memory_space<vmem>>, vector<1x128xf32>
    %86 = tpu.concatenate %64, %67, %70, %73, %76, %79, %82, %85 in 0 : vector<1x128xf32>, vector<1x128xf32>, vector<1x128xf32>, vector<1x128xf32>, vector<1x128xf32>, vector<1x128xf32>, vector<1x128xf32>, vector<1x128xf32> -> vector<8x128xf32>
    %c24 = arith.constant 24 : index
    %87 = memref.load %arg1[%c24] : memref<64xi32, #tpu.memory_space<smem>>
    %88 = arith.index_cast %87 : i32 to index
    %c0_36 = arith.constant 0 : index
    %89 = vector.load %arg2[%88, %c0_36] : memref<56x128xf32, #tpu.memory_space<vmem>>, vector<1x128xf32>
    %c25 = arith.constant 25 : index
    %90 = memref.load %arg1[%c25] : memref<64xi32, #tpu.memory_space<smem>>
    %91 = arith.index_cast %90 : i32 to index
    %c0_37 = arith.constant 0 : index
    %92 = vector.load %arg2[%91, %c0_37] : memref<56x128xf32, #tpu.memory_space<vmem>>, vector<1x128xf32>
    %c26 = arith.constant 26 : index
    %93 = memref.load %arg1[%c26] : memref<64xi32, #tpu.memory_space<smem>>
    %94 = arith.index_cast %93 : i32 to index
    %c0_38 = arith.constant 0 : index
    %95 = vector.load %arg2[%94, %c0_38] : memref<56x128xf32, #tpu.memory_space<vmem>>, vector<1x128xf32>
    %c27 = arith.constant 27 : index
    %96 = memref.load %arg1[%c27] : memref<64xi32, #tpu.memory_space<smem>>
    %97 = arith.index_cast %96 : i32 to index
    %c0_39 = arith.constant 0 : index
    %98 = vector.load %arg2[%97, %c0_39] : memref<56x128xf32, #tpu.memory_space<vmem>>, vector<1x128xf32>
    %c28 = arith.constant 28 : index
    %99 = memref.load %arg1[%c28] : memref<64xi32, #tpu.memory_space<smem>>
    %100 = arith.index_cast %99 : i32 to index
    %c0_40 = arith.constant 0 : index
    %101 = vector.load %arg2[%100, %c0_40] : memref<56x128xf32, #tpu.memory_space<vmem>>, vector<1x128xf32>
    %c29 = arith.constant 29 : index
    %102 = memref.load %arg1[%c29] : memref<64xi32, #tpu.memory_space<smem>>
    %103 = arith.index_cast %102 : i32 to index
    %c0_41 = arith.constant 0 : index
    %104 = vector.load %arg2[%103, %c0_41] : memref<56x128xf32, #tpu.memory_space<vmem>>, vector<1x128xf32>
    %c30 = arith.constant 30 : index
    %105 = memref.load %arg1[%c30] : memref<64xi32, #tpu.memory_space<smem>>
    %106 = arith.index_cast %105 : i32 to index
    %c0_42 = arith.constant 0 : index
    %107 = vector.load %arg2[%106, %c0_42] : memref<56x128xf32, #tpu.memory_space<vmem>>, vector<1x128xf32>
    %c31 = arith.constant 31 : index
    %108 = memref.load %arg1[%c31] : memref<64xi32, #tpu.memory_space<smem>>
    %109 = arith.index_cast %108 : i32 to index
    %c0_43 = arith.constant 0 : index
    %110 = vector.load %arg2[%109, %c0_43] : memref<56x128xf32, #tpu.memory_space<vmem>>, vector<1x128xf32>
    %111 = tpu.concatenate %89, %92, %95, %98, %101, %104, %107, %110 in 0 : vector<1x128xf32>, vector<1x128xf32>, vector<1x128xf32>, vector<1x128xf32>, vector<1x128xf32>, vector<1x128xf32>, vector<1x128xf32>, vector<1x128xf32> -> vector<8x128xf32>
    %c32 = arith.constant 32 : index
    %112 = memref.load %arg1[%c32] : memref<64xi32, #tpu.memory_space<smem>>
    %113 = arith.index_cast %112 : i32 to index
    %c0_44 = arith.constant 0 : index
    %114 = vector.load %arg2[%113, %c0_44] : memref<56x128xf32, #tpu.memory_space<vmem>>, vector<1x128xf32>
    %c33 = arith.constant 33 : index
    %115 = memref.load %arg1[%c33] : memref<64xi32, #tpu.memory_space<smem>>
    %116 = arith.index_cast %115 : i32 to index
    %c0_45 = arith.constant 0 : index
    %117 = vector.load %arg2[%116, %c0_45] : memref<56x128xf32, #tpu.memory_space<vmem>>, vector<1x128xf32>
    %c34 = arith.constant 34 : index
    %118 = memref.load %arg1[%c34] : memref<64xi32, #tpu.memory_space<smem>>
    %119 = arith.index_cast %118 : i32 to index
    %c0_46 = arith.constant 0 : index
    %120 = vector.load %arg2[%119, %c0_46] : memref<56x128xf32, #tpu.memory_space<vmem>>, vector<1x128xf32>
    %c35 = arith.constant 35 : index
    %121 = memref.load %arg1[%c35] : memref<64xi32, #tpu.memory_space<smem>>
    %122 = arith.index_cast %121 : i32 to index
    %c0_47 = arith.constant 0 : index
    %123 = vector.load %arg2[%122, %c0_47] : memref<56x128xf32, #tpu.memory_space<vmem>>, vector<1x128xf32>
    %c36 = arith.constant 36 : index
    %124 = memref.load %arg1[%c36] : memref<64xi32, #tpu.memory_space<smem>>
    %125 = arith.index_cast %124 : i32 to index
    %c0_48 = arith.constant 0 : index
    %126 = vector.load %arg2[%125, %c0_48] : memref<56x128xf32, #tpu.memory_space<vmem>>, vector<1x128xf32>
    %c37 = arith.constant 37 : index
    %127 = memref.load %arg1[%c37] : memref<64xi32, #tpu.memory_space<smem>>
    %128 = arith.index_cast %127 : i32 to index
    %c0_49 = arith.constant 0 : index
    %129 = vector.load %arg2[%128, %c0_49] : memref<56x128xf32, #tpu.memory_space<vmem>>, vector<1x128xf32>
    %c38 = arith.constant 38 : index
    %130 = memref.load %arg1[%c38] : memref<64xi32, #tpu.memory_space<smem>>
    %131 = arith.index_cast %130 : i32 to index
    %c0_50 = arith.constant 0 : index
    %132 = vector.load %arg2[%131, %c0_50] : memref<56x128xf32, #tpu.memory_space<vmem>>, vector<1x128xf32>
    %c39 = arith.constant 39 : index
    %133 = memref.load %arg1[%c39] : memref<64xi32, #tpu.memory_space<smem>>
    %134 = arith.index_cast %133 : i32 to index
    %c0_51 = arith.constant 0 : index
    %135 = vector.load %arg2[%134, %c0_51] : memref<56x128xf32, #tpu.memory_space<vmem>>, vector<1x128xf32>
    %136 = tpu.concatenate %114, %117, %120, %123, %126, %129, %132, %135 in 0 : vector<1x128xf32>, vector<1x128xf32>, vector<1x128xf32>, vector<1x128xf32>, vector<1x128xf32>, vector<1x128xf32>, vector<1x128xf32>, vector<1x128xf32> -> vector<8x128xf32>
    %c40 = arith.constant 40 : index
    %137 = memref.load %arg1[%c40] : memref<64xi32, #tpu.memory_space<smem>>
    %138 = arith.index_cast %137 : i32 to index
    %c0_52 = arith.constant 0 : index
    %139 = vector.load %arg2[%138, %c0_52] : memref<56x128xf32, #tpu.memory_space<vmem>>, vector<1x128xf32>
    %c41 = arith.constant 41 : index
    %140 = memref.load %arg1[%c41] : memref<64xi32, #tpu.memory_space<smem>>
    %141 = arith.index_cast %140 : i32 to index
    %c0_53 = arith.constant 0 : index
    %142 = vector.load %arg2[%141, %c0_53] : memref<56x128xf32, #tpu.memory_space<vmem>>, vector<1x128xf32>
    %c42 = arith.constant 42 : index
    %143 = memref.load %arg1[%c42] : memref<64xi32, #tpu.memory_space<smem>>
    %144 = arith.index_cast %143 : i32 to index
    %c0_54 = arith.constant 0 : index
    %145 = vector.load %arg2[%144, %c0_54] : memref<56x128xf32, #tpu.memory_space<vmem>>, vector<1x128xf32>
    %c43 = arith.constant 43 : index
    %146 = memref.load %arg1[%c43] : memref<64xi32, #tpu.memory_space<smem>>
    %147 = arith.index_cast %146 : i32 to index
    %c0_55 = arith.constant 0 : index
    %148 = vector.load %arg2[%147, %c0_55] : memref<56x128xf32, #tpu.memory_space<vmem>>, vector<1x128xf32>
    %c44 = arith.constant 44 : index
    %149 = memref.load %arg1[%c44] : memref<64xi32, #tpu.memory_space<smem>>
    %150 = arith.index_cast %149 : i32 to index
    %c0_56 = arith.constant 0 : index
    %151 = vector.load %arg2[%150, %c0_56] : memref<56x128xf32, #tpu.memory_space<vmem>>, vector<1x128xf32>
    %c45 = arith.constant 45 : index
    %152 = memref.load %arg1[%c45] : memref<64xi32, #tpu.memory_space<smem>>
    %153 = arith.index_cast %152 : i32 to index
    %c0_57 = arith.constant 0 : index
    %154 = vector.load %arg2[%153, %c0_57] : memref<56x128xf32, #tpu.memory_space<vmem>>, vector<1x128xf32>
    %c46 = arith.constant 46 : index
    %155 = memref.load %arg1[%c46] : memref<64xi32, #tpu.memory_space<smem>>
    %156 = arith.index_cast %155 : i32 to index
    %c0_58 = arith.constant 0 : index
    %157 = vector.load %arg2[%156, %c0_58] : memref<56x128xf32, #tpu.memory_space<vmem>>, vector<1x128xf32>
    %c47 = arith.constant 47 : index
    %158 = memref.load %arg1[%c47] : memref<64xi32, #tpu.memory_space<smem>>
    %159 = arith.index_cast %158 : i32 to index
    %c0_59 = arith.constant 0 : index
    %160 = vector.load %arg2[%159, %c0_59] : memref<56x128xf32, #tpu.memory_space<vmem>>, vector<1x128xf32>
    %161 = tpu.concatenate %139, %142, %145, %148, %151, %154, %157, %160 in 0 : vector<1x128xf32>, vector<1x128xf32>, vector<1x128xf32>, vector<1x128xf32>, vector<1x128xf32>, vector<1x128xf32>, vector<1x128xf32>, vector<1x128xf32> -> vector<8x128xf32>
    %c48 = arith.constant 48 : index
    %162 = memref.load %arg1[%c48] : memref<64xi32, #tpu.memory_space<smem>>
    %163 = arith.index_cast %162 : i32 to index
    %c0_60 = arith.constant 0 : index
    %164 = vector.load %arg2[%163, %c0_60] : memref<56x128xf32, #tpu.memory_space<vmem>>, vector<1x128xf32>
    %c49 = arith.constant 49 : index
    %165 = memref.load %arg1[%c49] : memref<64xi32, #tpu.memory_space<smem>>
    %166 = arith.index_cast %165 : i32 to index
    %c0_61 = arith.constant 0 : index
    %167 = vector.load %arg2[%166, %c0_61] : memref<56x128xf32, #tpu.memory_space<vmem>>, vector<1x128xf32>
    %c50 = arith.constant 50 : index
    %168 = memref.load %arg1[%c50] : memref<64xi32, #tpu.memory_space<smem>>
    %169 = arith.index_cast %168 : i32 to index
    %c0_62 = arith.constant 0 : index
    %170 = vector.load %arg2[%169, %c0_62] : memref<56x128xf32, #tpu.memory_space<vmem>>, vector<1x128xf32>
    %c51 = arith.constant 51 : index
    %171 = memref.load %arg1[%c51] : memref<64xi32, #tpu.memory_space<smem>>
    %172 = arith.index_cast %171 : i32 to index
    %c0_63 = arith.constant 0 : index
    %173 = vector.load %arg2[%172, %c0_63] : memref<56x128xf32, #tpu.memory_space<vmem>>, vector<1x128xf32>
    %c52 = arith.constant 52 : index
    %174 = memref.load %arg1[%c52] : memref<64xi32, #tpu.memory_space<smem>>
    %175 = arith.index_cast %174 : i32 to index
    %c0_64 = arith.constant 0 : index
    %176 = vector.load %arg2[%175, %c0_64] : memref<56x128xf32, #tpu.memory_space<vmem>>, vector<1x128xf32>
    %c53 = arith.constant 53 : index
    %177 = memref.load %arg1[%c53] : memref<64xi32, #tpu.memory_space<smem>>
    %178 = arith.index_cast %177 : i32 to index
    %c0_65 = arith.constant 0 : index
    %179 = vector.load %arg2[%178, %c0_65] : memref<56x128xf32, #tpu.memory_space<vmem>>, vector<1x128xf32>
    %c54 = arith.constant 54 : index
    %180 = memref.load %arg1[%c54] : memref<64xi32, #tpu.memory_space<smem>>
    %181 = arith.index_cast %180 : i32 to index
    %c0_66 = arith.constant 0 : index
    %182 = vector.load %arg2[%181, %c0_66] : memref<56x128xf32, #tpu.memory_space<vmem>>, vector<1x128xf32>
    %c55 = arith.constant 55 : index
    %183 = memref.load %arg1[%c55] : memref<64xi32, #tpu.memory_space<smem>>
    %184 = arith.index_cast %183 : i32 to index
    %c0_67 = arith.constant 0 : index
    %185 = vector.load %arg2[%184, %c0_67] : memref<56x128xf32, #tpu.memory_space<vmem>>, vector<1x128xf32>
    %186 = tpu.concatenate %164, %167, %170, %173, %176, %179, %182, %185 in 0 : vector<1x128xf32>, vector<1x128xf32>, vector<1x128xf32>, vector<1x128xf32>, vector<1x128xf32>, vector<1x128xf32>, vector<1x128xf32>, vector<1x128xf32> -> vector<8x128xf32>
    %c56 = arith.constant 56 : index
    %187 = memref.load %arg1[%c56] : memref<64xi32, #tpu.memory_space<smem>>
    %188 = arith.index_cast %187 : i32 to index
    %c0_68 = arith.constant 0 : index
    %189 = vector.load %arg2[%188, %c0_68] : memref<56x128xf32, #tpu.memory_space<vmem>>, vector<1x128xf32>
    %c57 = arith.constant 57 : index
    %190 = memref.load %arg1[%c57] : memref<64xi32, #tpu.memory_space<smem>>
    %191 = arith.index_cast %190 : i32 to index
    %c0_69 = arith.constant 0 : index
    %192 = vector.load %arg2[%191, %c0_69] : memref<56x128xf32, #tpu.memory_space<vmem>>, vector<1x128xf32>
    %c58 = arith.constant 58 : index
    %193 = memref.load %arg1[%c58] : memref<64xi32, #tpu.memory_space<smem>>
    %194 = arith.index_cast %193 : i32 to index
    %c0_70 = arith.constant 0 : index
    %195 = vector.load %arg2[%194, %c0_70] : memref<56x128xf32, #tpu.memory_space<vmem>>, vector<1x128xf32>
    %c59 = arith.constant 59 : index
    %196 = memref.load %arg1[%c59] : memref<64xi32, #tpu.memory_space<smem>>
    %197 = arith.index_cast %196 : i32 to index
    %c0_71 = arith.constant 0 : index
    %198 = vector.load %arg2[%197, %c0_71] : memref<56x128xf32, #tpu.memory_space<vmem>>, vector<1x128xf32>
    %c60 = arith.constant 60 : index
    %199 = memref.load %arg1[%c60] : memref<64xi32, #tpu.memory_space<smem>>
    %200 = arith.index_cast %199 : i32 to index
    %c0_72 = arith.constant 0 : index
    %201 = vector.load %arg2[%200, %c0_72] : memref<56x128xf32, #tpu.memory_space<vmem>>, vector<1x128xf32>
    %c61 = arith.constant 61 : index
    %202 = memref.load %arg1[%c61] : memref<64xi32, #tpu.memory_space<smem>>
    %203 = arith.index_cast %202 : i32 to index
    %c0_73 = arith.constant 0 : index
    %204 = vector.load %arg2[%203, %c0_73] : memref<56x128xf32, #tpu.memory_space<vmem>>, vector<1x128xf32>
    %c62 = arith.constant 62 : index
    %205 = memref.load %arg1[%c62] : memref<64xi32, #tpu.memory_space<smem>>
    %206 = arith.index_cast %205 : i32 to index
    %c0_74 = arith.constant 0 : index
    %207 = vector.load %arg2[%206, %c0_74] : memref<56x128xf32, #tpu.memory_space<vmem>>, vector<1x128xf32>
    %c63 = arith.constant 63 : index
    %208 = memref.load %arg1[%c63] : memref<64xi32, #tpu.memory_space<smem>>
    %209 = arith.index_cast %208 : i32 to index
    %c0_75 = arith.constant 0 : index
    %210 = vector.load %arg2[%209, %c0_75] : memref<56x128xf32, #tpu.memory_space<vmem>>, vector<1x128xf32>
    %211 = tpu.concatenate %189, %192, %195, %198, %201, %204, %207, %210 in 0 : vector<1x128xf32>, vector<1x128xf32>, vector<1x128xf32>, vector<1x128xf32>, vector<1x128xf32>, vector<1x128xf32>, vector<1x128xf32>, vector<1x128xf32> -> vector<8x128xf32>
    %cst = arith.constant 0.000000e+00 : f32
    %212 = vector.broadcast %cst : f32 to vector<8x32xf32>
    %213 = arith.negf %36 : vector<8x128xf32>
    %214 = math.exp %213 : vector<8x128xf32>
    %cst_76 = arith.constant 1.000000e+00 : f32
    %215 = vector.broadcast %cst_76 : f32 to vector<8x128xf32>
    %216 = arith.addf %215, %214 : vector<8x128xf32>
    %217 = arith.divf %215, %216 : vector<8x128xf32>
    %218 = math.tanh %36 : vector<8x128xf32>
    %219 = arith.select %11, %218, %217 : vector<8x128xi1>, vector<8x128xf32>
    %220 = vector.extract_strided_slice %219 {offsets = [0, 0], sizes = [8, 32], strides = [1, 1]} : vector<8x128xf32> to vector<8x32xf32>
    %221 = vector.extract_strided_slice %219 {offsets = [0, 32], sizes = [8, 32], strides = [1, 1]} : vector<8x128xf32> to vector<8x32xf32>
    %222 = vector.extract_strided_slice %219 {offsets = [0, 64], sizes = [8, 32], strides = [1, 1]} : vector<8x128xf32> to vector<8x32xf32>
    %223 = vector.extract_strided_slice %219 {offsets = [0, 96], sizes = [8, 32], strides = [1, 1]} : vector<8x128xf32> to vector<8x32xf32>
    %224 = arith.mulf %221, %212 : vector<8x32xf32>
    %225 = arith.mulf %220, %222 : vector<8x32xf32>
    %226 = arith.addf %224, %225 : vector<8x32xf32>
    %227 = math.tanh %226 : vector<8x32xf32>
    %228 = arith.mulf %223, %227 : vector<8x32xf32>
    %229 = arith.truncf %228 : vector<8x32xf32> to vector<8x32xbf16>
    %cst_77 = arith.constant dense<0.000000e+00> : vector<8x128xf32>
    %230 = tpu.matmul %229, %0, %cst_77 {dimension_numbers = #tpu.dot_dimension_numbers<[1], [0], [0], [1], [0, 0, 1, 1], [], []>} : vector<8x32xbf16>, vector<32x128xbf16>, vector<8x128xf32> -> vector<8x128xf32>
    %231 = arith.addf %61, %230 : vector<8x128xf32>
    %232 = arith.negf %231 : vector<8x128xf32>
    %233 = math.exp %232 : vector<8x128xf32>
    %cst_78 = arith.constant 1.000000e+00 : f32
    %234 = vector.broadcast %cst_78 : f32 to vector<8x128xf32>
    %235 = arith.addf %234, %233 : vector<8x128xf32>
    %236 = arith.divf %234, %235 : vector<8x128xf32>
    %237 = math.tanh %231 : vector<8x128xf32>
    %238 = arith.select %11, %237, %236 : vector<8x128xi1>, vector<8x128xf32>
    %239 = vector.extract_strided_slice %238 {offsets = [0, 0], sizes = [8, 32], strides = [1, 1]} : vector<8x128xf32> to vector<8x32xf32>
    %240 = vector.extract_strided_slice %238 {offsets = [0, 32], sizes = [8, 32], strides = [1, 1]} : vector<8x128xf32> to vector<8x32xf32>
    %241 = vector.extract_strided_slice %238 {offsets = [0, 64], sizes = [8, 32], strides = [1, 1]} : vector<8x128xf32> to vector<8x32xf32>
    %242 = vector.extract_strided_slice %238 {offsets = [0, 96], sizes = [8, 32], strides = [1, 1]} : vector<8x128xf32> to vector<8x32xf32>
    %243 = arith.mulf %240, %226 : vector<8x32xf32>
    %244 = arith.mulf %239, %241 : vector<8x32xf32>
    %245 = arith.addf %243, %244 : vector<8x32xf32>
    %246 = math.tanh %245 : vector<8x32xf32>
    %247 = arith.mulf %242, %246 : vector<8x32xf32>
    %248 = arith.truncf %247 : vector<8x32xf32> to vector<8x32xbf16>
    %cst_79 = arith.constant dense<0.000000e+00> : vector<8x128xf32>
    %249 = tpu.matmul %248, %0, %cst_79 {dimension_numbers = #tpu.dot_dimension_numbers<[1], [0], [0], [1], [0, 0, 1, 1], [], []>} : vector<8x32xbf16>, vector<32x128xbf16>, vector<8x128xf32> -> vector<8x128xf32>
    %250 = arith.addf %86, %249 : vector<8x128xf32>
    %251 = arith.negf %250 : vector<8x128xf32>
    %252 = math.exp %251 : vector<8x128xf32>
    %cst_80 = arith.constant 1.000000e+00 : f32
    %253 = vector.broadcast %cst_80 : f32 to vector<8x128xf32>
    %254 = arith.addf %253, %252 : vector<8x128xf32>
    %255 = arith.divf %253, %254 : vector<8x128xf32>
    %256 = math.tanh %250 : vector<8x128xf32>
    %257 = arith.select %11, %256, %255 : vector<8x128xi1>, vector<8x128xf32>
    %258 = vector.extract_strided_slice %257 {offsets = [0, 0], sizes = [8, 32], strides = [1, 1]} : vector<8x128xf32> to vector<8x32xf32>
    %259 = vector.extract_strided_slice %257 {offsets = [0, 32], sizes = [8, 32], strides = [1, 1]} : vector<8x128xf32> to vector<8x32xf32>
    %260 = vector.extract_strided_slice %257 {offsets = [0, 64], sizes = [8, 32], strides = [1, 1]} : vector<8x128xf32> to vector<8x32xf32>
    %261 = vector.extract_strided_slice %257 {offsets = [0, 96], sizes = [8, 32], strides = [1, 1]} : vector<8x128xf32> to vector<8x32xf32>
    %262 = arith.mulf %259, %245 : vector<8x32xf32>
    %263 = arith.mulf %258, %260 : vector<8x32xf32>
    %264 = arith.addf %262, %263 : vector<8x32xf32>
    %265 = math.tanh %264 : vector<8x32xf32>
    %266 = arith.mulf %261, %265 : vector<8x32xf32>
    %267 = arith.truncf %266 : vector<8x32xf32> to vector<8x32xbf16>
    %cst_81 = arith.constant dense<0.000000e+00> : vector<8x128xf32>
    %268 = tpu.matmul %267, %0, %cst_81 {dimension_numbers = #tpu.dot_dimension_numbers<[1], [0], [0], [1], [0, 0, 1, 1], [], []>} : vector<8x32xbf16>, vector<32x128xbf16>, vector<8x128xf32> -> vector<8x128xf32>
    %269 = arith.addf %111, %268 : vector<8x128xf32>
    %270 = arith.negf %269 : vector<8x128xf32>
    %271 = math.exp %270 : vector<8x128xf32>
    %cst_82 = arith.constant 1.000000e+00 : f32
    %272 = vector.broadcast %cst_82 : f32 to vector<8x128xf32>
    %273 = arith.addf %272, %271 : vector<8x128xf32>
    %274 = arith.divf %272, %273 : vector<8x128xf32>
    %275 = math.tanh %269 : vector<8x128xf32>
    %276 = arith.select %11, %275, %274 : vector<8x128xi1>, vector<8x128xf32>
    %277 = vector.extract_strided_slice %276 {offsets = [0, 0], sizes = [8, 32], strides = [1, 1]} : vector<8x128xf32> to vector<8x32xf32>
    %278 = vector.extract_strided_slice %276 {offsets = [0, 32], sizes = [8, 32], strides = [1, 1]} : vector<8x128xf32> to vector<8x32xf32>
    %279 = vector.extract_strided_slice %276 {offsets = [0, 64], sizes = [8, 32], strides = [1, 1]} : vector<8x128xf32> to vector<8x32xf32>
    %280 = vector.extract_strided_slice %276 {offsets = [0, 96], sizes = [8, 32], strides = [1, 1]} : vector<8x128xf32> to vector<8x32xf32>
    %281 = arith.mulf %278, %264 : vector<8x32xf32>
    %282 = arith.mulf %277, %279 : vector<8x32xf32>
    %283 = arith.addf %281, %282 : vector<8x32xf32>
    %284 = math.tanh %283 : vector<8x32xf32>
    %285 = arith.mulf %280, %284 : vector<8x32xf32>
    %286 = arith.truncf %285 : vector<8x32xf32> to vector<8x32xbf16>
    %cst_83 = arith.constant dense<0.000000e+00> : vector<8x128xf32>
    %287 = tpu.matmul %286, %0, %cst_83 {dimension_numbers = #tpu.dot_dimension_numbers<[1], [0], [0], [1], [0, 0, 1, 1], [], []>} : vector<8x32xbf16>, vector<32x128xbf16>, vector<8x128xf32> -> vector<8x128xf32>
    %288 = arith.addf %136, %287 : vector<8x128xf32>
    %289 = arith.negf %288 : vector<8x128xf32>
    %290 = math.exp %289 : vector<8x128xf32>
    %cst_84 = arith.constant 1.000000e+00 : f32
    %291 = vector.broadcast %cst_84 : f32 to vector<8x128xf32>
    %292 = arith.addf %291, %290 : vector<8x128xf32>
    %293 = arith.divf %291, %292 : vector<8x128xf32>
    %294 = math.tanh %288 : vector<8x128xf32>
    %295 = arith.select %11, %294, %293 : vector<8x128xi1>, vector<8x128xf32>
    %296 = vector.extract_strided_slice %295 {offsets = [0, 0], sizes = [8, 32], strides = [1, 1]} : vector<8x128xf32> to vector<8x32xf32>
    %297 = vector.extract_strided_slice %295 {offsets = [0, 32], sizes = [8, 32], strides = [1, 1]} : vector<8x128xf32> to vector<8x32xf32>
    %298 = vector.extract_strided_slice %295 {offsets = [0, 64], sizes = [8, 32], strides = [1, 1]} : vector<8x128xf32> to vector<8x32xf32>
    %299 = vector.extract_strided_slice %295 {offsets = [0, 96], sizes = [8, 32], strides = [1, 1]} : vector<8x128xf32> to vector<8x32xf32>
    %300 = arith.mulf %297, %283 : vector<8x32xf32>
    %301 = arith.mulf %296, %298 : vector<8x32xf32>
    %302 = arith.addf %300, %301 : vector<8x32xf32>
    %303 = math.tanh %302 : vector<8x32xf32>
    %304 = arith.mulf %299, %303 : vector<8x32xf32>
    %305 = arith.truncf %304 : vector<8x32xf32> to vector<8x32xbf16>
    %cst_85 = arith.constant dense<0.000000e+00> : vector<8x128xf32>
    %306 = tpu.matmul %305, %0, %cst_85 {dimension_numbers = #tpu.dot_dimension_numbers<[1], [0], [0], [1], [0, 0, 1, 1], [], []>} : vector<8x32xbf16>, vector<32x128xbf16>, vector<8x128xf32> -> vector<8x128xf32>
    %307 = arith.addf %161, %306 : vector<8x128xf32>
    %308 = arith.negf %307 : vector<8x128xf32>
    %309 = math.exp %308 : vector<8x128xf32>
    %cst_86 = arith.constant 1.000000e+00 : f32
    %310 = vector.broadcast %cst_86 : f32 to vector<8x128xf32>
    %311 = arith.addf %310, %309 : vector<8x128xf32>
    %312 = arith.divf %310, %311 : vector<8x128xf32>
    %313 = math.tanh %307 : vector<8x128xf32>
    %314 = arith.select %11, %313, %312 : vector<8x128xi1>, vector<8x128xf32>
    %315 = vector.extract_strided_slice %314 {offsets = [0, 0], sizes = [8, 32], strides = [1, 1]} : vector<8x128xf32> to vector<8x32xf32>
    %316 = vector.extract_strided_slice %314 {offsets = [0, 32], sizes = [8, 32], strides = [1, 1]} : vector<8x128xf32> to vector<8x32xf32>
    %317 = vector.extract_strided_slice %314 {offsets = [0, 64], sizes = [8, 32], strides = [1, 1]} : vector<8x128xf32> to vector<8x32xf32>
    %318 = vector.extract_strided_slice %314 {offsets = [0, 96], sizes = [8, 32], strides = [1, 1]} : vector<8x128xf32> to vector<8x32xf32>
    %319 = arith.mulf %316, %302 : vector<8x32xf32>
    %320 = arith.mulf %315, %317 : vector<8x32xf32>
    %321 = arith.addf %319, %320 : vector<8x32xf32>
    %322 = math.tanh %321 : vector<8x32xf32>
    %323 = arith.mulf %318, %322 : vector<8x32xf32>
    %324 = arith.truncf %323 : vector<8x32xf32> to vector<8x32xbf16>
    %cst_87 = arith.constant dense<0.000000e+00> : vector<8x128xf32>
    %325 = tpu.matmul %324, %0, %cst_87 {dimension_numbers = #tpu.dot_dimension_numbers<[1], [0], [0], [1], [0, 0, 1, 1], [], []>} : vector<8x32xbf16>, vector<32x128xbf16>, vector<8x128xf32> -> vector<8x128xf32>
    %326 = arith.addf %186, %325 : vector<8x128xf32>
    %327 = arith.negf %326 : vector<8x128xf32>
    %328 = math.exp %327 : vector<8x128xf32>
    %cst_88 = arith.constant 1.000000e+00 : f32
    %329 = vector.broadcast %cst_88 : f32 to vector<8x128xf32>
    %330 = arith.addf %329, %328 : vector<8x128xf32>
    %331 = arith.divf %329, %330 : vector<8x128xf32>
    %332 = math.tanh %326 : vector<8x128xf32>
    %333 = arith.select %11, %332, %331 : vector<8x128xi1>, vector<8x128xf32>
    %334 = vector.extract_strided_slice %333 {offsets = [0, 0], sizes = [8, 32], strides = [1, 1]} : vector<8x128xf32> to vector<8x32xf32>
    %335 = vector.extract_strided_slice %333 {offsets = [0, 32], sizes = [8, 32], strides = [1, 1]} : vector<8x128xf32> to vector<8x32xf32>
    %336 = vector.extract_strided_slice %333 {offsets = [0, 64], sizes = [8, 32], strides = [1, 1]} : vector<8x128xf32> to vector<8x32xf32>
    %337 = vector.extract_strided_slice %333 {offsets = [0, 96], sizes = [8, 32], strides = [1, 1]} : vector<8x128xf32> to vector<8x32xf32>
    %338 = arith.mulf %335, %321 : vector<8x32xf32>
    %339 = arith.mulf %334, %336 : vector<8x32xf32>
    %340 = arith.addf %338, %339 : vector<8x32xf32>
    %341 = math.tanh %340 : vector<8x32xf32>
    %342 = arith.mulf %337, %341 : vector<8x32xf32>
    %343 = arith.truncf %342 : vector<8x32xf32> to vector<8x32xbf16>
    %cst_89 = arith.constant dense<0.000000e+00> : vector<8x128xf32>
    %344 = tpu.matmul %343, %0, %cst_89 {dimension_numbers = #tpu.dot_dimension_numbers<[1], [0], [0], [1], [0, 0, 1, 1], [], []>} : vector<8x32xbf16>, vector<32x128xbf16>, vector<8x128xf32> -> vector<8x128xf32>
    %345 = arith.addf %211, %344 : vector<8x128xf32>
    %346 = arith.negf %345 : vector<8x128xf32>
    %347 = math.exp %346 : vector<8x128xf32>
    %cst_90 = arith.constant 1.000000e+00 : f32
    %348 = vector.broadcast %cst_90 : f32 to vector<8x128xf32>
    %349 = arith.addf %348, %347 : vector<8x128xf32>
    %350 = arith.divf %348, %349 : vector<8x128xf32>
    %351 = math.tanh %345 : vector<8x128xf32>
    %352 = arith.select %11, %351, %350 : vector<8x128xi1>, vector<8x128xf32>
    %353 = vector.extract_strided_slice %352 {offsets = [0, 0], sizes = [8, 32], strides = [1, 1]} : vector<8x128xf32> to vector<8x32xf32>
    %354 = vector.extract_strided_slice %352 {offsets = [0, 32], sizes = [8, 32], strides = [1, 1]} : vector<8x128xf32> to vector<8x32xf32>
    %355 = vector.extract_strided_slice %352 {offsets = [0, 64], sizes = [8, 32], strides = [1, 1]} : vector<8x128xf32> to vector<8x32xf32>
    %356 = vector.extract_strided_slice %352 {offsets = [0, 96], sizes = [8, 32], strides = [1, 1]} : vector<8x128xf32> to vector<8x32xf32>
    %357 = arith.mulf %354, %340 : vector<8x32xf32>
    %358 = arith.mulf %353, %355 : vector<8x32xf32>
    %359 = arith.addf %357, %358 : vector<8x32xf32>
    %360 = math.tanh %359 : vector<8x32xf32>
    %361 = arith.mulf %356, %360 : vector<8x32xf32>
    %362 = tpu.concatenate %228, %247, %266, %285, %304, %323, %342, %361 in 0 : vector<8x32xf32>, vector<8x32xf32>, vector<8x32xf32>, vector<8x32xf32>, vector<8x32xf32>, vector<8x32xf32>, vector<8x32xf32>, vector<8x32xf32> -> vector<64x32xf32>
    %363 = arith.truncf %362 : vector<64x32xf32> to vector<64x32xbf16>
    %cst_91 = arith.constant dense<0.000000e+00> : vector<64x128xf32>
    %364 = tpu.matmul %363, %1, %cst_91 {dimension_numbers = #tpu.dot_dimension_numbers<[1], [0], [0], [1], [0, 0, 1, 1], [], []>} : vector<64x32xbf16>, vector<32x128xbf16>, vector<64x128xf32> -> vector<64x128xf32>
    %365 = vector.broadcast %3 : vector<1x128xf32> to vector<64x128xf32>
    %366 = arith.addf %364, %365 : vector<64x128xf32>
    %367 = vector.extract_strided_slice %366 {offsets = [0, 0], sizes = [8, 128], strides = [1, 1]} : vector<64x128xf32> to vector<8x128xf32>
    %368 = arith.negf %367 : vector<8x128xf32>
    %369 = math.exp %368 : vector<8x128xf32>
    %cst_92 = arith.constant 1.000000e+00 : f32
    %370 = vector.broadcast %cst_92 : f32 to vector<8x128xf32>
    %371 = arith.addf %370, %369 : vector<8x128xf32>
    %372 = arith.divf %370, %371 : vector<8x128xf32>
    %373 = math.tanh %367 : vector<8x128xf32>
    %374 = arith.select %11, %373, %372 : vector<8x128xi1>, vector<8x128xf32>
    %375 = vector.extract_strided_slice %374 {offsets = [0, 0], sizes = [8, 32], strides = [1, 1]} : vector<8x128xf32> to vector<8x32xf32>
    %376 = vector.extract_strided_slice %374 {offsets = [0, 32], sizes = [8, 32], strides = [1, 1]} : vector<8x128xf32> to vector<8x32xf32>
    %377 = vector.extract_strided_slice %374 {offsets = [0, 64], sizes = [8, 32], strides = [1, 1]} : vector<8x128xf32> to vector<8x32xf32>
    %378 = vector.extract_strided_slice %374 {offsets = [0, 96], sizes = [8, 32], strides = [1, 1]} : vector<8x128xf32> to vector<8x32xf32>
    %379 = arith.mulf %376, %212 : vector<8x32xf32>
    %380 = arith.mulf %375, %377 : vector<8x32xf32>
    %381 = arith.addf %379, %380 : vector<8x32xf32>
    %382 = math.tanh %381 : vector<8x32xf32>
    %383 = arith.mulf %378, %382 : vector<8x32xf32>
    %384 = vector.extract_strided_slice %366 {offsets = [8, 0], sizes = [8, 128], strides = [1, 1]} : vector<64x128xf32> to vector<8x128xf32>
    %385 = arith.truncf %383 : vector<8x32xf32> to vector<8x32xbf16>
    %cst_93 = arith.constant dense<0.000000e+00> : vector<8x128xf32>
    %386 = tpu.matmul %385, %2, %cst_93 {dimension_numbers = #tpu.dot_dimension_numbers<[1], [0], [0], [1], [0, 0, 1, 1], [], []>} : vector<8x32xbf16>, vector<32x128xbf16>, vector<8x128xf32> -> vector<8x128xf32>
    %387 = arith.addf %384, %386 : vector<8x128xf32>
    %388 = arith.negf %387 : vector<8x128xf32>
    %389 = math.exp %388 : vector<8x128xf32>
    %cst_94 = arith.constant 1.000000e+00 : f32
    %390 = vector.broadcast %cst_94 : f32 to vector<8x128xf32>
    %391 = arith.addf %390, %389 : vector<8x128xf32>
    %392 = arith.divf %390, %391 : vector<8x128xf32>
    %393 = math.tanh %387 : vector<8x128xf32>
    %394 = arith.select %11, %393, %392 : vector<8x128xi1>, vector<8x128xf32>
    %395 = vector.extract_strided_slice %394 {offsets = [0, 0], sizes = [8, 32], strides = [1, 1]} : vector<8x128xf32> to vector<8x32xf32>
    %396 = vector.extract_strided_slice %394 {offsets = [0, 32], sizes = [8, 32], strides = [1, 1]} : vector<8x128xf32> to vector<8x32xf32>
    %397 = vector.extract_strided_slice %394 {offsets = [0, 64], sizes = [8, 32], strides = [1, 1]} : vector<8x128xf32> to vector<8x32xf32>
    %398 = vector.extract_strided_slice %394 {offsets = [0, 96], sizes = [8, 32], strides = [1, 1]} : vector<8x128xf32> to vector<8x32xf32>
    %399 = arith.mulf %396, %381 : vector<8x32xf32>
    %400 = arith.mulf %395, %397 : vector<8x32xf32>
    %401 = arith.addf %399, %400 : vector<8x32xf32>
    %402 = math.tanh %401 : vector<8x32xf32>
    %403 = arith.mulf %398, %402 : vector<8x32xf32>
    %404 = vector.extract_strided_slice %366 {offsets = [16, 0], sizes = [8, 128], strides = [1, 1]} : vector<64x128xf32> to vector<8x128xf32>
    %405 = arith.truncf %403 : vector<8x32xf32> to vector<8x32xbf16>
    %cst_95 = arith.constant dense<0.000000e+00> : vector<8x128xf32>
    %406 = tpu.matmul %405, %2, %cst_95 {dimension_numbers = #tpu.dot_dimension_numbers<[1], [0], [0], [1], [0, 0, 1, 1], [], []>} : vector<8x32xbf16>, vector<32x128xbf16>, vector<8x128xf32> -> vector<8x128xf32>
    %407 = arith.addf %404, %406 : vector<8x128xf32>
    %408 = arith.negf %407 : vector<8x128xf32>
    %409 = math.exp %408 : vector<8x128xf32>
    %cst_96 = arith.constant 1.000000e+00 : f32
    %410 = vector.broadcast %cst_96 : f32 to vector<8x128xf32>
    %411 = arith.addf %410, %409 : vector<8x128xf32>
    %412 = arith.divf %410, %411 : vector<8x128xf32>
    %413 = math.tanh %407 : vector<8x128xf32>
    %414 = arith.select %11, %413, %412 : vector<8x128xi1>, vector<8x128xf32>
    %415 = vector.extract_strided_slice %414 {offsets = [0, 0], sizes = [8, 32], strides = [1, 1]} : vector<8x128xf32> to vector<8x32xf32>
    %416 = vector.extract_strided_slice %414 {offsets = [0, 32], sizes = [8, 32], strides = [1, 1]} : vector<8x128xf32> to vector<8x32xf32>
    %417 = vector.extract_strided_slice %414 {offsets = [0, 64], sizes = [8, 32], strides = [1, 1]} : vector<8x128xf32> to vector<8x32xf32>
    %418 = vector.extract_strided_slice %414 {offsets = [0, 96], sizes = [8, 32], strides = [1, 1]} : vector<8x128xf32> to vector<8x32xf32>
    %419 = arith.mulf %416, %401 : vector<8x32xf32>
    %420 = arith.mulf %415, %417 : vector<8x32xf32>
    %421 = arith.addf %419, %420 : vector<8x32xf32>
    %422 = math.tanh %421 : vector<8x32xf32>
    %423 = arith.mulf %418, %422 : vector<8x32xf32>
    %424 = vector.extract_strided_slice %366 {offsets = [24, 0], sizes = [8, 128], strides = [1, 1]} : vector<64x128xf32> to vector<8x128xf32>
    %425 = arith.truncf %423 : vector<8x32xf32> to vector<8x32xbf16>
    %cst_97 = arith.constant dense<0.000000e+00> : vector<8x128xf32>
    %426 = tpu.matmul %425, %2, %cst_97 {dimension_numbers = #tpu.dot_dimension_numbers<[1], [0], [0], [1], [0, 0, 1, 1], [], []>} : vector<8x32xbf16>, vector<32x128xbf16>, vector<8x128xf32> -> vector<8x128xf32>
    %427 = arith.addf %424, %426 : vector<8x128xf32>
    %428 = arith.negf %427 : vector<8x128xf32>
    %429 = math.exp %428 : vector<8x128xf32>
    %cst_98 = arith.constant 1.000000e+00 : f32
    %430 = vector.broadcast %cst_98 : f32 to vector<8x128xf32>
    %431 = arith.addf %430, %429 : vector<8x128xf32>
    %432 = arith.divf %430, %431 : vector<8x128xf32>
    %433 = math.tanh %427 : vector<8x128xf32>
    %434 = arith.select %11, %433, %432 : vector<8x128xi1>, vector<8x128xf32>
    %435 = vector.extract_strided_slice %434 {offsets = [0, 0], sizes = [8, 32], strides = [1, 1]} : vector<8x128xf32> to vector<8x32xf32>
    %436 = vector.extract_strided_slice %434 {offsets = [0, 32], sizes = [8, 32], strides = [1, 1]} : vector<8x128xf32> to vector<8x32xf32>
    %437 = vector.extract_strided_slice %434 {offsets = [0, 64], sizes = [8, 32], strides = [1, 1]} : vector<8x128xf32> to vector<8x32xf32>
    %438 = vector.extract_strided_slice %434 {offsets = [0, 96], sizes = [8, 32], strides = [1, 1]} : vector<8x128xf32> to vector<8x32xf32>
    %439 = arith.mulf %436, %421 : vector<8x32xf32>
    %440 = arith.mulf %435, %437 : vector<8x32xf32>
    %441 = arith.addf %439, %440 : vector<8x32xf32>
    %442 = math.tanh %441 : vector<8x32xf32>
    %443 = arith.mulf %438, %442 : vector<8x32xf32>
    %444 = vector.extract_strided_slice %366 {offsets = [32, 0], sizes = [8, 128], strides = [1, 1]} : vector<64x128xf32> to vector<8x128xf32>
    %445 = arith.truncf %443 : vector<8x32xf32> to vector<8x32xbf16>
    %cst_99 = arith.constant dense<0.000000e+00> : vector<8x128xf32>
    %446 = tpu.matmul %445, %2, %cst_99 {dimension_numbers = #tpu.dot_dimension_numbers<[1], [0], [0], [1], [0, 0, 1, 1], [], []>} : vector<8x32xbf16>, vector<32x128xbf16>, vector<8x128xf32> -> vector<8x128xf32>
    %447 = arith.addf %444, %446 : vector<8x128xf32>
    %448 = arith.negf %447 : vector<8x128xf32>
    %449 = math.exp %448 : vector<8x128xf32>
    %cst_100 = arith.constant 1.000000e+00 : f32
    %450 = vector.broadcast %cst_100 : f32 to vector<8x128xf32>
    %451 = arith.addf %450, %449 : vector<8x128xf32>
    %452 = arith.divf %450, %451 : vector<8x128xf32>
    %453 = math.tanh %447 : vector<8x128xf32>
    %454 = arith.select %11, %453, %452 : vector<8x128xi1>, vector<8x128xf32>
    %455 = vector.extract_strided_slice %454 {offsets = [0, 0], sizes = [8, 32], strides = [1, 1]} : vector<8x128xf32> to vector<8x32xf32>
    %456 = vector.extract_strided_slice %454 {offsets = [0, 32], sizes = [8, 32], strides = [1, 1]} : vector<8x128xf32> to vector<8x32xf32>
    %457 = vector.extract_strided_slice %454 {offsets = [0, 64], sizes = [8, 32], strides = [1, 1]} : vector<8x128xf32> to vector<8x32xf32>
    %458 = vector.extract_strided_slice %454 {offsets = [0, 96], sizes = [8, 32], strides = [1, 1]} : vector<8x128xf32> to vector<8x32xf32>
    %459 = arith.mulf %456, %441 : vector<8x32xf32>
    %460 = arith.mulf %455, %457 : vector<8x32xf32>
    %461 = arith.addf %459, %460 : vector<8x32xf32>
    %462 = math.tanh %461 : vector<8x32xf32>
    %463 = arith.mulf %458, %462 : vector<8x32xf32>
    %464 = vector.extract_strided_slice %366 {offsets = [40, 0], sizes = [8, 128], strides = [1, 1]} : vector<64x128xf32> to vector<8x128xf32>
    %465 = arith.truncf %463 : vector<8x32xf32> to vector<8x32xbf16>
    %cst_101 = arith.constant dense<0.000000e+00> : vector<8x128xf32>
    %466 = tpu.matmul %465, %2, %cst_101 {dimension_numbers = #tpu.dot_dimension_numbers<[1], [0], [0], [1], [0, 0, 1, 1], [], []>} : vector<8x32xbf16>, vector<32x128xbf16>, vector<8x128xf32> -> vector<8x128xf32>
    %467 = arith.addf %464, %466 : vector<8x128xf32>
    %468 = arith.negf %467 : vector<8x128xf32>
    %469 = math.exp %468 : vector<8x128xf32>
    %cst_102 = arith.constant 1.000000e+00 : f32
    %470 = vector.broadcast %cst_102 : f32 to vector<8x128xf32>
    %471 = arith.addf %470, %469 : vector<8x128xf32>
    %472 = arith.divf %470, %471 : vector<8x128xf32>
    %473 = math.tanh %467 : vector<8x128xf32>
    %474 = arith.select %11, %473, %472 : vector<8x128xi1>, vector<8x128xf32>
    %475 = vector.extract_strided_slice %474 {offsets = [0, 0], sizes = [8, 32], strides = [1, 1]} : vector<8x128xf32> to vector<8x32xf32>
    %476 = vector.extract_strided_slice %474 {offsets = [0, 32], sizes = [8, 32], strides = [1, 1]} : vector<8x128xf32> to vector<8x32xf32>
    %477 = vector.extract_strided_slice %474 {offsets = [0, 64], sizes = [8, 32], strides = [1, 1]} : vector<8x128xf32> to vector<8x32xf32>
    %478 = vector.extract_strided_slice %474 {offsets = [0, 96], sizes = [8, 32], strides = [1, 1]} : vector<8x128xf32> to vector<8x32xf32>
    %479 = arith.mulf %476, %461 : vector<8x32xf32>
    %480 = arith.mulf %475, %477 : vector<8x32xf32>
    %481 = arith.addf %479, %480 : vector<8x32xf32>
    %482 = math.tanh %481 : vector<8x32xf32>
    %483 = arith.mulf %478, %482 : vector<8x32xf32>
    %484 = vector.extract_strided_slice %366 {offsets = [48, 0], sizes = [8, 128], strides = [1, 1]} : vector<64x128xf32> to vector<8x128xf32>
    %485 = arith.truncf %483 : vector<8x32xf32> to vector<8x32xbf16>
    %cst_103 = arith.constant dense<0.000000e+00> : vector<8x128xf32>
    %486 = tpu.matmul %485, %2, %cst_103 {dimension_numbers = #tpu.dot_dimension_numbers<[1], [0], [0], [1], [0, 0, 1, 1], [], []>} : vector<8x32xbf16>, vector<32x128xbf16>, vector<8x128xf32> -> vector<8x128xf32>
    %487 = arith.addf %484, %486 : vector<8x128xf32>
    %488 = arith.negf %487 : vector<8x128xf32>
    %489 = math.exp %488 : vector<8x128xf32>
    %cst_104 = arith.constant 1.000000e+00 : f32
    %490 = vector.broadcast %cst_104 : f32 to vector<8x128xf32>
    %491 = arith.addf %490, %489 : vector<8x128xf32>
    %492 = arith.divf %490, %491 : vector<8x128xf32>
    %493 = math.tanh %487 : vector<8x128xf32>
    %494 = arith.select %11, %493, %492 : vector<8x128xi1>, vector<8x128xf32>
    %495 = vector.extract_strided_slice %494 {offsets = [0, 0], sizes = [8, 32], strides = [1, 1]} : vector<8x128xf32> to vector<8x32xf32>
    %496 = vector.extract_strided_slice %494 {offsets = [0, 32], sizes = [8, 32], strides = [1, 1]} : vector<8x128xf32> to vector<8x32xf32>
    %497 = vector.extract_strided_slice %494 {offsets = [0, 64], sizes = [8, 32], strides = [1, 1]} : vector<8x128xf32> to vector<8x32xf32>
    %498 = vector.extract_strided_slice %494 {offsets = [0, 96], sizes = [8, 32], strides = [1, 1]} : vector<8x128xf32> to vector<8x32xf32>
    %499 = arith.mulf %496, %481 : vector<8x32xf32>
    %500 = arith.mulf %495, %497 : vector<8x32xf32>
    %501 = arith.addf %499, %500 : vector<8x32xf32>
    %502 = math.tanh %501 : vector<8x32xf32>
    %503 = arith.mulf %498, %502 : vector<8x32xf32>
    %504 = vector.extract_strided_slice %366 {offsets = [56, 0], sizes = [8, 128], strides = [1, 1]} : vector<64x128xf32> to vector<8x128xf32>
    %505 = arith.truncf %503 : vector<8x32xf32> to vector<8x32xbf16>
    %cst_105 = arith.constant dense<0.000000e+00> : vector<8x128xf32>
    %506 = tpu.matmul %505, %2, %cst_105 {dimension_numbers = #tpu.dot_dimension_numbers<[1], [0], [0], [1], [0, 0, 1, 1], [], []>} : vector<8x32xbf16>, vector<32x128xbf16>, vector<8x128xf32> -> vector<8x128xf32>
    %507 = arith.addf %504, %506 : vector<8x128xf32>
    %508 = arith.negf %507 : vector<8x128xf32>
    %509 = math.exp %508 : vector<8x128xf32>
    %cst_106 = arith.constant 1.000000e+00 : f32
    %510 = vector.broadcast %cst_106 : f32 to vector<8x128xf32>
    %511 = arith.addf %510, %509 : vector<8x128xf32>
    %512 = arith.divf %510, %511 : vector<8x128xf32>
    %513 = math.tanh %507 : vector<8x128xf32>
    %514 = arith.select %11, %513, %512 : vector<8x128xi1>, vector<8x128xf32>
    %515 = vector.extract_strided_slice %514 {offsets = [0, 0], sizes = [8, 32], strides = [1, 1]} : vector<8x128xf32> to vector<8x32xf32>
    %516 = vector.extract_strided_slice %514 {offsets = [0, 32], sizes = [8, 32], strides = [1, 1]} : vector<8x128xf32> to vector<8x32xf32>
    %517 = vector.extract_strided_slice %514 {offsets = [0, 64], sizes = [8, 32], strides = [1, 1]} : vector<8x128xf32> to vector<8x32xf32>
    %518 = vector.extract_strided_slice %514 {offsets = [0, 96], sizes = [8, 32], strides = [1, 1]} : vector<8x128xf32> to vector<8x32xf32>
    %519 = arith.mulf %516, %501 : vector<8x32xf32>
    %520 = arith.mulf %515, %517 : vector<8x32xf32>
    %521 = arith.addf %519, %520 : vector<8x32xf32>
    %522 = math.tanh %521 : vector<8x32xf32>
    %523 = arith.mulf %518, %522 : vector<8x32xf32>
    %524 = tpu.concatenate %383, %403, %423, %443, %463, %483, %503, %523 in 0 : vector<8x32xf32>, vector<8x32xf32>, vector<8x32xf32>, vector<8x32xf32>, vector<8x32xf32>, vector<8x32xf32>, vector<8x32xf32>, vector<8x32xf32> -> vector<64x32xf32>
    %525 = arith.truncf %524 : vector<64x32xf32> to vector<64x32xbf16>
    %cst_107 = arith.constant dense<0.000000e+00> : vector<64x10xf32>
    %526 = tpu.matmul %525, %4, %cst_107 {dimension_numbers = #tpu.dot_dimension_numbers<[1], [0], [0], [1], [0, 0, 1, 1], [], []>} : vector<64x32xbf16>, vector<32x10xbf16>, vector<64x10xf32> -> vector<64x10xf32>
    %527 = vector.broadcast %5 : vector<1x10xf32> to vector<64x10xf32>
    %528 = arith.addf %526, %527 : vector<64x10xf32>
    %cst_108 = arith.constant dense<0xFF800000> : vector<64xf32>
    %529 = vector.multi_reduction <maximumf>, %528, %cst_108 [1] : vector<64x10xf32> to vector<64xf32>
    %530 = vector.shape_cast %529 : vector<64xf32> to vector<64x1xf32>
    %531 = vector.broadcast %530 : vector<64x1xf32> to vector<64x10xf32>
    %532 = arith.subf %528, %531 : vector<64x10xf32>
    %533 = math.exp %532 : vector<64x10xf32>
    %cst_109 = arith.constant dense<0.000000e+00> : vector<64xf32>
    %534 = vector.multi_reduction <add>, %533, %cst_109 [1] : vector<64x10xf32> to vector<64xf32>
    %535 = vector.shape_cast %534 : vector<64xf32> to vector<64x1xf32>
    %536 = math.log %535 : vector<64x1xf32>
    %537 = vector.broadcast %536 : vector<64x1xf32> to vector<64x10xf32>
    %538 = arith.subf %532, %537 : vector<64x10xf32>
    %c0_110 = arith.constant 0 : index
    %c0_111 = arith.constant 0 : index
    %539 = vector.load %arg9[%c0_110, %c0_111] : memref<64x10xf32, #tpu.memory_space<vmem>>, vector<64x10xf32>
    tpu.vector_store %arg9[%c0_110, %c0_111], %538 {strides = array<i32>} : memref<64x10xf32, #tpu.memory_space<vmem>>, vector<64x10xf32>,
    return
  }
  func.func @transform_0(%arg0: i32, %arg1: memref<64xi32, #tpu.memory_space<smem>>) -> (i32, i32) {
    %c0_i32 = arith.constant 0 : i32
    %c0_i32_0 = arith.constant 0 : i32
    %c0_i32_1 = arith.constant 0 : i32
    return %c0_i32, %c0_i32_0 : i32, i32
  }
  func.func @transform_1(%arg0: i32, %arg1: memref<64xi32, #tpu.memory_space<smem>>) -> (i32, i32) {
    %c0_i32 = arith.constant 0 : i32
    %c0_i32_0 = arith.constant 0 : i32
    %c0_i32_1 = arith.constant 0 : i32
    return %c0_i32, %c0_i32_0 : i32, i32
  }
  func.func @transform_2(%arg0: i32, %arg1: memref<64xi32, #tpu.memory_space<smem>>) -> (i32, i32) {
    %c0_i32 = arith.constant 0 : i32
    %c0_i32_0 = arith.constant 0 : i32
    %c0_i32_1 = arith.constant 0 : i32
    return %c0_i32, %c0_i32_0 : i32, i32
  }
  func.func @transform_3(%arg0: i32, %arg1: memref<64xi32, #tpu.memory_space<smem>>) -> (i32, i32) {
    %c0_i32 = arith.constant 0 : i32
    %c0_i32_0 = arith.constant 0 : i32
    %c0_i32_1 = arith.constant 0 : i32
    return %c0_i32, %c0_i32_0 : i32, i32
  }
  func.func @transform_4(%arg0: i32, %arg1: memref<64xi32, #tpu.memory_space<smem>>) -> (i32, i32) {
    %c0_i32 = arith.constant 0 : i32
    %c0_i32_0 = arith.constant 0 : i32
    %c0_i32_1 = arith.constant 0 : i32
    return %c0_i32, %c0_i32_0 : i32, i32
  }
  func.func @transform_5(%arg0: i32, %arg1: memref<64xi32, #tpu.memory_space<smem>>) -> (i32, i32) {
    %c0_i32 = arith.constant 0 : i32
    %c0_i32_0 = arith.constant 0 : i32
    %c0_i32_1 = arith.constant 0 : i32
    return %c0_i32, %c0_i32_0 : i32, i32
  }
  func.func @transform_6(%arg0: i32, %arg1: memref<64xi32, #tpu.memory_space<smem>>) -> (i32, i32) {
    %c0_i32 = arith.constant 0 : i32
    %c0_i32_0 = arith.constant 0 : i32
    %c0_i32_1 = arith.constant 0 : i32
    return %c0_i32, %c0_i32_0 : i32, i32
  }
  func.func @transform_7(%arg0: i32, %arg1: memref<64xi32, #tpu.memory_space<smem>>) -> (i32, i32) {
    %c0_i32 = arith.constant 0 : i32
    %c0_i32_0 = arith.constant 0 : i32
    %c0_i32_1 = arith.constant 0 : i32
    return %c0_i32, %c0_i32_0 : i32, i32
  }
}

</mosaic_0001>

<bundles_post_ra>
// kernel: simple_lstm_forward.1
= control target key start
LH: loop header
LB: loop body
LE: loop exit
PB: predicated region body
PF: predicated region fallthrough
CT: control target
= control target key end

     0   :  { %s3359_s0 = inlined_call_operand.vmem [shape: s32[64], index: 0, kind: input, shape index: {}]   ;;  %s3360_s1 = inlined_call_operand.vmem [shape: f32[56,128], index: 1, kind: input, shape index: {}]   ;;  %s3361_s2 = inlined_call_operand.hbm [shape: bf16[32,128], index: 2, kind: input, shape index: {}]   ;;  %s3362_s3 = inlined_call_operand.vmem [shape: bf16[32,128], index: 3, kind: input, shape index: {}]   ;;  %s3363_s4 = inlined_call_operand.hbm [shape: bf16[32,128], index: 4, kind: input, shape index: {}]   ;;  %s3364_s5 = inlined_call_operand.hbm [shape: f32[1,128], index: 5, kind: input, shape index: {}]   ;;  %s3365_s6 = inlined_call_operand.vmem [shape: bf16[32,10], index: 6, kind: input, shape index: {}]   ;;  %s3366_s7 = inlined_call_operand.hbm [shape: f32[1,10], index: 7, kind: input, shape index: {}]   ;;  %s3367_s8 = inlined_call_operand.vmem [shape: f32[64,10], index: 8, kind: output, shape index: {}]  }
   0x1   :  { %s13_s29 = sshll.u32 %s3359_s0, 4  ;;  %s14_s29 = int_to_ptr.vmem [resolvable:$true] %s13_s29 }
   0x2   :  { %s2505_s30 = scalar_lea.vmem %s14_s29, 16  ;;  %p2510_p1 = scmp.lt.s32.totalorder %s14_s29, %s14_s29 }
   0x3   :  { %p2506_p0 = scmp.ne.s32.totalorder %s14_s29, %s2505_s30  ;;  %p2511_p2 = scmp.lt.s32.totalorder %s2505_s30, %s2505_s30 }
   0x5   :  { %p2512_p3 = por %p2511_p2, %p2510_p1 }
   0x7   :  { %p2513_p4 = pnand %p2512_p3, %p2506_p0 }
   0x9   :  { %2516 = shalt.err (!%p2513_p4)  }
   0xa   :  { %s2605_s9 = smov [#allocation3]  }
   0xb   :  { %16 = dma.vmem_to_smem %s14_s29, 16, %s2605_s9, [#allocation2] }
   0xc   :  { %2597 = dma.done.wait [#allocation2], 16 }
   0xd   :  { %2598 = vsyncadd [#allocation2], 4294967280 }
   0xe   :  { %18 = sfence }
   0xf   :  { %19 = vsyncpa [#allocation5], 0 }
  0x10   :  { %20 = vsyncpa [#allocation7], 0 }
  0x11   :  { %21 = vsyncpa [#allocation10], 0  ;;  %s2606_s10 = smov [#allocation6]   ;;  %s2607_s12 = smov [#allocation4]  }
  0x12   :  { %s43_s11 = sshll.u32 %s2606_s10, 4  ;;  %s29_s0 = sshll.u32 %s2607_s12, 4  ;;  %s44_s11 = int_to_ptr.vmem [resolvable:$true] %s43_s11  ;;  %s30_s0 = int_to_ptr.vmem [resolvable:$true] %s29_s0 }
  0x13   :  { %s2525_s13 = scalar_lea.vmem %s44_s11, 256  ;;  %p2530_p6 = scmp.lt.s32.totalorder %s44_s11, %s44_s11 }
  0x14   :  { %p2526_p5 = scmp.ne.s32.totalorder %s44_s11, %s2525_s13  ;;  %p2531_p7 = scmp.lt.s32.totalorder %s2525_s13, %s2525_s13 }
  0x16   :  { %p2532_p8 = por %p2531_p7, %p2530_p6 }
  0x18   :  { %p2533_p9 = pnand %p2532_p8, %p2526_p5 }
  0x1a   :  { %2536 = shalt.err (!%p2533_p9)
}
  0x1b   :  { %s2608_s14 = smov 64   ;;  %s2609_s15 = smov 4  }
  0x1c   :  { %49 = dma.hbm_to_vmem [thread:$0]  %s3363_s4, 256, %s44_s11, [#allocation7], %s2608_s14, %s2608_s14, %s2609_s15  }
  0x1d   :  { %s2545_s18 = scalar_lea.vmem %s30_s0, 256  ;;  %p2550_p11 = scmp.lt.s32.totalorder %s30_s0, %s30_s0 }
  0x1e   :  { %p2546_p10 = scmp.ne.s32.totalorder %s30_s0, %s2545_s18  ;;  %p2551_p12 = scmp.lt.s32.totalorder %s2545_s18, %s2545_s18 }
  0x20   :  { %p2552_p13 = por %p2551_p12, %p2550_p11 }
  0x22   :  { %p2553_p0 = pnand %p2552_p13, %p2546_p10 }
  0x24   :  { %2556 = shalt.err (!%p2553_p0)
}
  0x25   :  { %35 = dma.hbm_to_vmem [thread:$0]  %s3361_s2, 256, %s30_s0, [#allocation5], %s2608_s14, %s2608_s14, %s2609_s15  }
  0x26   :  { %s2610_s21 = smov [#allocation8]   ;;  %s2611_s23 = smov [#allocation9]  }
  0x27   :  { %s56_s22 = sshll.u32 %s2610_s21, 4  ;;  %s68_s24 = sshll.u32 %s2611_s23, 4  ;;  %s57_s22 = int_to_ptr.vmem [resolvable:$true] %s56_s22  ;;  %s69_s24 = int_to_ptr.vmem [resolvable:$true] %s68_s24 }
  0x28   :  { %s2565_s4 = scalar_lea.vmem %s57_s22, 16  ;;  %s2569_s25 = scalar_lea.vmem %s57_s22, 32 }
  0x29   :  { %p2566_p1 = scmp.ne.s32.totalorder %s57_s22, %s2565_s4  ;;  %p2570_p2 = scmp.lt.s32.totalorder %s57_s22, %s57_s22 }
  0x2a   :  { %p2571_p3 = scmp.lt.s32.totalorder %s2569_s25, %s2565_s4 }
  0x2c   :  { %p2572_p4 = por %p2571_p3, %p2570_p2 }
  0x2e   :  { %p2573_p5 = pnand %p2572_p4, %p2566_p1 }
  0x30   :  { %2576 = shalt.err (!%p2573_p5)
}
  0x31   :  { %59 = dma.hbm_to_vmem [thread:$0]  %s3364_s5, 16, %s57_s22, [#allocation7]  }
  0x32   :  { %s2585_s28 = scalar_lea.vmem %s69_s24, 16  ;;  %s2589_s2 = scalar_lea.vmem %s69_s24, 32 }
  0x33   :  { %p2586_p6 = scmp.ne.s32.totalorder %s69_s24, %s2585_s28  ;;  %p2590_p7 = scmp.lt.s32.totalorder %s69_s24, %s69_s24 }
  0x34   :  { %p2591_p8 = scmp.lt.s32.totalorder %s2589_s2, %s2585_s28 }
  0x36   :  { %p2592_p9 = por %p2591_p8, %p2590_p7 }
  0x38   :  { %p2593_p10 = pnand %p2592_p9, %p2586_p6 }
  0x3a   :  { %2596 = shalt.err (!%p2593_p10)
}
  0x3b   :  { %71 = dma.hbm_to_vmem [thread:$0]  %s3366_s7, 16, %s69_s24, [#allocation10]  }
  0x3c   :  { %2599 = dma.done.wait [#allocation5], 256  }
  0x3d   :  { %2600 = vsyncadd [#allocation5], 4294967040 }
  0x3e   :  { %2601 = dma.done.wait [#allocation7], 272  }
  0x3f   :  { %2602 = vsyncadd [#allocation7], 4294967024 }
  0x40   :  { %2603 = dma.done.wait [#allocation10], 16  }
  0x41   :  { %2604 = vsyncadd [#allocation10], 4294967280  ;;  %s108_s9 = sld [smem:[#allocation3]]  ;;  %vm153_vm0 = vcmask 1040384   ;;  %vm155_vm1 = vcmask 1041408   ;;  %vm157_vm2 = vcmask 1042432   ;;  %v103_v25 = vlaneseq }
  0x42   :  { %s2026_s5 = sld [smem:[#allocation3 + $0x1]]  ;;  %vm159_vm3 = vcmask 1043456   ;;  %vm161_vm4 = vcmask 1044480   ;;  %vm163_vm5 = vcmask 1045504   ;;  %vm165_vm6 = vcmask 1046528   ;;  %v2721_v36 = vld [vmem:[#allocation4 + $0x8] sm:$0xff]  }
  0x43   :  { %s2027_s10 = sld [smem:[#allocation3 + $0x2]]  ;;  %v104_v26 = vand.u32 127, %v103_v25  ;;  %v2613_v37 = vmov 0.0   ;;  %vm2614_vm10 = vmmov 0   ;;  %v2727_v38 = vld [vmem:[#allocation4] sm:$0xff]   ;;  %vm572_vm11 = vcmask 261120  }
  0x44   :  { %s2028_s11 = sld [smem:[#allocation3 + $0x3]]  ;;  %2191 = vmatprep.subr.bf16.mxu1 %v2613_v37  ;;  %2195 = vmatprep.mubr.msk.bf16.mxu1 %vm2614_vm10, %v2613_v37  ;;  %vm1850_vm12 = vcmask 80896  }
  0x45   :  { %s2029_s12 = sld [smem:[#allocation3 + $0x4]]  ;;  %vm105_vm7 = vcmp.ge.s32.totalorder %v104_v26, 64  ;;  %vm106_vm8 = vcmp.lt.s32.totalorder %v104_v26, 96  ;;  %2192 = vmatpush3.bf16.msra.mxu1 %v2721_v36  ;;  %2207 = vmatprep.subr.bf16.mxu0 %v2613_v37 }
  0x46   :  { %s2030_s0 = sld [smem:[#allocation3 + $0x5]]  ;;  %vm2710_vm9 = vmand %vm105_vm7, %vm106_vm8  ;;  %2193 = vmatprep.subr.bf16.mxu1 %v2613_v37  ;;  %2208 = vmatpush3.bf16.msra.mxu0 %v2721_v36 }
  0x47   :  { %s109_s16 = scalar_lea.vmem %s3360_s1, %s108_s9  ;;  %s2031_s17 = sld [smem:[#allocation3 + $0x6]]  ;;  %2209 = vmatprep.subr.bf16.mxu0 %v2613_v37  ;;  %2211 = vmatprep.mubr.msk.bf16.mxu0 %vm2614_vm10, %v2613_v37 }
  0x48   :  { %v110_v0 = vld [vmem:[%s109_s16] sm:$0x1]  ;;  %s112_s19 = scalar_lea.vmem %s3360_s1, %s2026_s5  ;;  %s2032_s20 = sld [smem:[#allocation3 + $0x7]] }
  0x49   :  { %v113_v1 = vld [vmem:[%s112_s19] sm:$0x1]  ;;  %s115_s23 = scalar_lea.vmem %s3360_s1, %s2027_s10  ;;  %2194 = vmatpush3.bf16.msra.mxu1 %v2727_v38  ;;  %s2034_s15 = sld [smem:[#allocation3 + $0x9]] }
  0x4a   :  { %v116_v2 = vld [vmem:[%s115_s23] sm:$0x1]  ;;  %s118_s25 = scalar_lea.vmem %s3360_s1, %s2028_s11  ;;  %v133_v3 = vrot.slane %v113_v1, 7  ;;  %2199 = vmatprep.subr.bf16.mxu1 %v2613_v37  ;;  %2210 = vmatpush3.bf16.msra.mxu0 %v2727_v38  ;;  %s2035_s16 = sld [smem:[#allocation3 + $0xa]] }
  0x4b   :  { %v119_v4 = vld [vmem:[%s118_s25] sm:$0x1]  ;;  %s121_s28 = scalar_lea.vmem %s3360_s1, %s2029_s12  ;;  %v136_v5 = vrot.slane %v116_v2, 6  ;;  %2223 = vmatprep.subr.bf16.mxu0 %v2613_v37  ;;  %s2036_s7 = sld [smem:[#allocation3 + $0xb]] }
  0x4c   :  { %v122_v6 = vld [vmem:[%s121_s28] sm:$0x1]  ;;  %s124_s30 = scalar_lea.vmem %s3360_s1, %s2030_s0  ;;  %v139_v7 = vrot.slane %v119_v4, 5  ;;  %v154_v8 = vsel %vm153_vm0, %v110_v0, %v133_v3  ;;  %s2612_s0 = smov 32  }
  0x4d   :  { %v125_v9 = vld [vmem:[%s124_s30] sm:$0x1]  ;;  %s127_s10 = scalar_lea.vmem %s3360_s1, %s2031_s17  ;;  %v142_v10 = vrot.slane %v122_v6, 4  ;;  %v156_v11 = vsel %vm155_vm1, %v154_v8, %v136_v5  ;;  %s2033_s17 = sld [smem:[#allocation3 + $0x8]] }
  0x4e   :  { %v128_v12 = vld [vmem:[%s127_s10] sm:$0x1]  ;;  %s130_s13 = scalar_lea.vmem %s3360_s1, %s2032_s20  ;;  %v145_v13 = vrot.slane %v125_v9, 3  ;;  %v158_v14 = vsel %vm157_vm2, %v156_v11, %v139_v7  ;;  %s2037_s21 = sld [smem:[#allocation3 + $0xc]] }
  0x4f   :  { %v131_v15 = vld [vmem:[%s130_s13] sm:$0x1]  ;;  %v148_v16 = vrot.slane %v128_v12, 2  ;;  %v160_v17 = vsel %vm159_vm3, %v158_v14, %v142_v10  ;;  %s171_s20 = scalar_lea.vmem %s3360_s1, %s2034_s15  ;;  %s2038_s27 = sld [smem:[#allocation3 + $0xd]] }
  0x50   :  { %v151_v18 = vrot.slane %v131_v15, 1  ;;  %v162_v19 = vsel %vm161_vm4, %v160_v17, %v145_v13  ;;  %v172_v44 = vld [vmem:[%s171_s20] sm:$0x1]  ;;  %s174_s24 = scalar_lea.vmem %s3360_s1, %s2035_s16  ;;  %s2039_s30 = sld [smem:[#allocation3 + $0xe]] }
  0x51   :  { %v164_v20 = vsel %vm163_vm5, %v162_v19, %v148_v16  ;;  %v175_v45 = vld [vmem:[%s174_s24] sm:$0x1]  ;;  %s177_s29 = scalar_lea.vmem %s3360_s1, %s2036_s7  ;;  %v192_v46 = vrot.slane %v172_v44, 7  ;;  %s2040_s11 = sld [smem:[#allocation3 + $0xf]] }
  0x52   :  { %v166_v21 = vsel %vm165_vm6, %v164_v20, %v151_v18  ;;  %v178_v48 = vld [vmem:[%s177_s29] sm:$0x1]  ;;  %v195_v49 = vrot.slane %v175_v45, 6  ;;  %s2043_s22 = sld [smem:[#allocation3 + $0x12]] }
  0x53   :  { %v2089_v22 = vmul.f32 -1.442695, %v166_v21  ;;  %s168_s26 = scalar_lea.vmem %s3360_s1, %s2033_s17  ;;  %v198_v52 = vrot.slane %v178_v48, 5  ;;  %s2041_s23 = sld [smem:[#allocation3 + $0x10]] }
  0x54   :  { %v169_v47 = vld [vmem:[%s168_s26] sm:$0x1]  ;;  %s180_s10 = scalar_lea.vmem %s3360_s1, %s2037_s21  ;;  %s2042_s21 = sld [smem:[#allocation3 + $0x11]] }
  0x55   :  { %2345 = vpow2.f32 %v2089_v22  ;;  %v212_v50 = vsel %vm153_vm0, %v169_v47, %v192_v46  ;;  %v181_v51 = vld [vmem:[%s180_s10] sm:$0x1]  ;;  %s183_s15 = scalar_lea.vmem %s3360_s1, %s2038_s27  ;;  %s2044_s24 = sld [smem:[#allocation3 + $0x13]] }
  0x56   :  { %2347 = vtanh.f32 %v166_v21  ;;  %v213_v53 = vsel %vm155_vm1, %v212_v50, %v195_v49  ;;  %v184_v54 = vld [vmem:[%s183_s15] sm:$0x1]  ;;  %s186_s7 = scalar_lea.vmem %s3360_s1, %s2039_s30  ;;  %v201_v55 = vrot.slane %v181_v51, 4  ;;  %s2045_s27 = sld [smem:[#allocation3 + $0x14]] }
  0x57   :  { %v214_v56 = vsel %vm157_vm2, %v213_v53, %v198_v52  ;;  %v187_v57 = vld [vmem:[%s186_s7] sm:$0x1]  ;;  %s189_s20 = scalar_lea.vmem %s3360_s1, %s2040_s11  ;;  %v204_v58 = vrot.slane %v184_v54, 3  ;;  %s2046_s10 = sld [smem:[#allocation3 + $0x15]] }
  0x58   :  { %v215_v59 = vsel %vm159_vm3, %v214_v56, %v201_v55  ;;  %v190_v60 = vld [vmem:[%s189_s20] sm:$0x1]  ;;  %v207_v61 = vrot.slane %v187_v57, 2  ;;  %s226_s29 = scalar_lea.vmem %s3360_s1, %s2043_s22  ;;  %s2047_s15 = sld [smem:[#allocation3 + $0x16]] }
  0x59   :  { %v216_v62 = vsel %vm161_vm4, %v215_v59, %v204_v58  ;;  %v210_v63 = vrot.slane %v190_v60, 1  ;;  %s220_s5 = scalar_lea.vmem %s3360_s1, %s2041_s23  ;;  %s2048_s18 = sld [smem:[#allocation3 + $0x17]] }
  0x5a   :  { %v217_v0 = vsel %vm163_vm5, %v216_v62, %v207_v61  ;;  %s223_s26 = scalar_lea.vmem %s3360_s1, %s2042_s21  ;;  %v221_v26 = vld [vmem:[%s220_s5] sm:$0x1]  ;;  %s2051_s28 = sld [smem:[#allocation3 + $0x1a]] }
  0x5b   :  { %v218_v1 = vsel %vm165_vm6, %v217_v0, %v210_v63  ;;  %s229_s13 = scalar_lea.vmem %s3360_s1, %s2044_s24  ;;  %s2049_s2 = sld [smem:[#allocation3 + $0x18]] }
  0x5c   :  { %s232_s7 = scalar_lea.vmem %s3360_s1, %s2045_s27  ;;  %s2050_s27 = sld [smem:[#allocation3 + $0x19]] }
  0x5d   :  { %s235_s21 = scalar_lea.vmem %s3360_s1, %s2046_s10  ;;  %s2053_s10 = sld [smem:[#allocation3 + $0x1c]] }
  0x5e   :  { %s238_s24 = scalar_lea.vmem %s3360_s1, %s2047_s15  ;;  %s2056_s4 = sld [smem:[#allocation3 + $0x1f]] }
  0x5f   :  { %s2059_s11 = sld [smem:[#allocation3 + $0x22]] }
  0x60   :  { %s2057_s12 = sld [smem:[#allocation3 + $0x20]] }
  0x61   :  { %s272_s17 = scalar_lea.vmem %s3360_s1, %s2049_s2  ;;  %s2064_s30 = sld [smem:[#allocation3 + $0x27]] }
  0x62   :  { %v2346_v23 = vpop.eup %2345  ;;  %s275_s5 = scalar_lea.vmem %s3360_s1, %s2050_s27  ;;  %s2065_s19 = sld [smem:[#allocation3 + $0x28]] }
  0x63   :  { %v534_v24 = vadd.f32 1.0, %v2346_v23  ;;  %v2348_v27 = vpop.eup %2347  ;;  %v224_v23 = vld [vmem:[%s223_s26] sm:$0x1]  ;;  %s241_s26 = scalar_lea.vmem %s3360_s1, %s2048_s18  ;;  %s2067_s18 = sld [smem:[#allocation3 + $0x2a]] }
  0x64   :  { %v244_v25 = vrot.slane %v224_v23, 7  ;;  %v242_v44 = vld [vmem:[%s241_s26] sm:$0x1]  ;;  %s2072_s15 = sld [smem:[#allocation3 + $0x2f]] }
  0x65   :  { %2349 = vrcp.f32 %v534_v24  ;;  %v227_v24 = vld [vmem:[%s226_s29] sm:$0x1]  ;;  %v262_v47 = vrot.slane %v242_v44, 1  ;;  %s2052_s29 = sld [smem:[#allocation3 + $0x1b]] }
  0x66   :  { %s324_s23 = scalar_lea.vmem %s3360_s1, %s2057_s12  ;;  %s2086_s22 = sld [smem:[#allocation3 + $0x3d]] }
  0x67   :  { %s2087_s25 = sld [smem:[#allocation3 + $0x3e]] }
  0x68   :  { %s376_s2 = scalar_lea.vmem %s3360_s1, %s2065_s19 }
  0x6b   :  { %s281_s20 = scalar_lea.vmem %s3360_s1, %s2052_s29 }
  0x72   :  { %v2350_v29 = vpop.eup %2349 }
  0x73   :  { %v538_v30 = vsel %vm2710_vm9, %v2348_v27, %v2350_v29  ;;  %v230_v27 = vld [vmem:[%s229_s13] sm:$0x1]  ;;  %v247_v29 = vrot.slane %v227_v24, 6  ;;  %s278_s13 = scalar_lea.vmem %s3360_s1, %s2051_s28  ;;  %s2075_s28 = sld [smem:[#allocation3 + $0x32]] }
  0x74   :  { %541 = vrot.lane.b32.xlu0 %v538_v30, %s2608_s14  ;;  %v539_v33 = vmul.f32 0.0, %v538_v30 }
  0x79   :  { %s434_s12 = scalar_lea.vmem %s3360_s1, %s2075_s28 }
  0xe6   :  { %v542_v31 = vpop.permute.xlu0 %541 }
  0xe7   :  { %v544_v32 = vmul.f32 %v542_v31, %v538_v30  ;;  %v233_v31 = vld [vmem:[%s232_s7] sm:$0x1]  ;;  %s2054_s7 = sld [smem:[#allocation3 + $0x1d]] }
  0xe9   :  { %546 = vrot.lane.b32.xlu0 %v544_v32, %s2612_s0  ;;  %v250_v32 = vrot.slane %v230_v27, 5 }
  0xed   :  { %s287_s27 = scalar_lea.vmem %s3360_s1, %s2054_s7  ;;  %s2061_s7 = sld [smem:[#allocation3 + $0x24]] }
 0x15b   :  { %v547_v34 = vpop.permute.xlu0 %546 }
 0x15c   :  { %v2718_v35 = vadd.f32 %v547_v34, %v539_v33  ;;  %v236_v34 = vld [vmem:[%s235_s21] sm:$0x1]  ;;  %s2055_s21 = sld [smem:[#allocation3 + $0x1e]] }
 0x15e   :  { %2351 = vtanh.f32 %v2718_v35 }
 0x162   :  { %s290_s29 = scalar_lea.vmem %s3360_s1, %s2055_s21 }
 0x16b   :  { %v2352_v39 = vpop.eup %2351 }
 0x16c   :  { %552 = vrot.lane.b32.xlu1 %v2352_v39, %s2608_s14 }
 0x1de   :  { %v553_v40 = vpop.permute.xlu1 %552 }
 0x1df   :  { %v2740_v41 = vmul.f32 %v553_v40, %v538_v30  ;;  %v264_v30 = vsel %vm153_vm0, %v221_v26, %v244_v25  ;;  %v239_v40 = vld [vmem:[%s238_s24] sm:$0x1]  ;;  %s284_s24 = scalar_lea.vmem %s3360_s1, %s2053_s10  ;;  %s2058_s10 = sld [smem:[#allocation3 + $0x21]] }
 0x1e0   :  { %v265_v33 = vsel %vm155_vm1, %v264_v30, %v247_v29  ;;  %v259_v45 = vrot.slane %v239_v40, 2 }
 0x1e1   :  { %v556_v42 = vpack.c.bf16 %v2740_v41, %v2740_v41  ;;  %v266_v39 = vsel %vm157_vm2, %v265_v33, %v250_v32 }
 0x1e3   :  { %558 = vrot.lane.b32.xlu1 %v556_v42, %s2612_s0  ;;  %v256_v42 = vrot.slane %v236_v34, 3 }
 0x255   :  { %v559_v43 = vpop.permute.xlu1 %558 }
 0x256   :  { %2196 = vmatmul.mubr.msk.bf16.vlgmr.msra.gmra.mxu1 %vm572_vm11, %v559_v43 }
 0x257   :  { %2200 = vmatpush3.bf16.msra.mxu1 %v2721_v36  ;;  %2203 = vmatprep.mubr.msk.bf16.mxu1 %vm2614_vm10, %v2613_v37 }
 0x258   :  { %2201 = vmatprep.subr.bf16.mxu1 %v2613_v37 }
 0x25b   :  { %2202 = vmatpush3.bf16.msra.mxu1 %v2727_v38 }
 0x25c   :  { %2215 = vmatprep.subr.bf16.mxu1 %v2613_v37 }
 0x316   :  { %v610_v2 = vpop.f32.mrf.mxu1 }
 0x317   :  { %v616_v3 = vadd.f32 %v610_v2, %v218_v1 }
 0x318   :  { %v2197_v4 = vpop.f32.mrf.mxu1 }
 0x319   :  { %v2093_v5 = vmul.f32 -1.442695, %v616_v3 }
 0x31a   :  { %v613_v6 = vpop.f32.mrf.mxu1 }
 0x31b   :  { %2353 = vpow2.f32 %v2093_v5 }
 0x31c   :  { %v2198_v7 = vpop.f32.mrf.mxu1  ;;  %2355 = vtanh.f32 %v616_v3 }
 0x31d   :  { %v276_v7 = vld [vmem:[%s275_s5] sm:$0x1]  ;;  %s293_s5 = scalar_lea.vmem %s3360_s1, %s2056_s4 }
 0x31e   :  { %v294_v24 = vld [vmem:[%s293_s5] sm:$0x1] }
 0x31f   :  { %v314_v27 = vrot.slane %v294_v24, 1 }
 0x328   :  { %v2354_v8 = vpop.eup %2353 }
 0x329   :  { %v620_v9 = vadd.f32 1.0, %v2354_v8  ;;  %v2356_v10 = vpop.eup %2355  ;;  %v279_v8 = vld [vmem:[%s278_s13] sm:$0x1]  ;;  %s2060_s13 = sld [smem:[#allocation3 + $0x23]] }
 0x32b   :  { %2357 = vrcp.f32 %v620_v9  ;;  %v296_v9 = vrot.slane %v276_v7, 7 }
 0x32f   :  { %s333_s26 = scalar_lea.vmem %s3360_s1, %s2060_s13 }
 0x338   :  { %v2358_v11 = vpop.eup %2357 }
 0x339   :  { %v624_v12 = vsel %vm2710_vm9, %v2356_v10, %v2358_v11  ;;  %v273_v10 = vld [vmem:[%s272_s17] sm:$0x1]  ;;  %s327_s17 = scalar_lea.vmem %s3360_s1, %s2058_s10 }
 0x33a   :  { %627 = vrot.lane.b32.xlu0 %v624_v12, %s2608_s14  ;;  %v625_v15 = vmul.f32 %v624_v12, %v2718_v35  ;;  %v253_v35 = vrot.slane %v233_v31, 4  ;;  %v282_v11 = vld [vmem:[%s281_s20] sm:$0x1]  ;;  %s330_s20 = scalar_lea.vmem %s3360_s1, %s2059_s11  ;;  %s2084_s11 = sld [smem:[#allocation3 + $0x3b]] }
 0x33c   :  { %v267_v43 = vsel %vm159_vm3, %v266_v39, %v253_v35 }
 0x33d   :  { %v268_v46 = vsel %vm161_vm4, %v267_v43, %v256_v42 }
 0x33e   :  { %v269_v48 = vsel %vm163_vm5, %v268_v46, %v259_v45 }
 0x33f   :  { %v270_v49 = vsel %vm165_vm6, %v269_v48, %v262_v47 }
 0x340   :  { %s489_s4 = scalar_lea.vmem %s3360_s1, %s2084_s11 }
 0x3ac   :  { %v628_v13 = vpop.permute.xlu0 %627 }
 0x3ad   :  { %v630_v14 = vmul.f32 %v628_v13, %v624_v12  ;;  %v316_v13 = vsel %vm153_vm0, %v273_v10, %v296_v9 }
 0x3af   :  { %632 = vrot.lane.b32.xlu1 %v630_v14, %s2612_s0  ;;  %v285_v14 = vld [vmem:[%s284_s24] sm:$0x1]  ;;  %s2062_s24 = sld [smem:[#allocation3 + $0x25]] }
 0x3b5   :  { %s339_s10 = scalar_lea.vmem %s3360_s1, %s2062_s24  ;;  %s2069_s24 = sld [smem:[#allocation3 + $0x2c]] }
 0x421   :  { %v633_v16 = vpop.permute.xlu1 %632 }
 0x422   :  { %v2788_v17 = vadd.f32 %v633_v16, %v625_v15  ;;  %v302_v15 = vrot.slane %v282_v11, 5 }
 0x424   :  { %2359 = vtanh.f32 %v2788_v17 }
 0x431   :  { %v2360_v18 = vpop.eup %2359 }
 0x432   :  { %638 = vrot.lane.b32.xlu0 %v2360_v18, %s2608_s14  ;;  %v305_v18 = vrot.slane %v285_v14, 4 }
 0x4a4   :  { %v639_v19 = vpop.permute.xlu0 %638 }
 0x4a5   :  { %v2792_v20 = vmul.f32 %v639_v19, %v624_v12  ;;  %v299_v12 = vrot.slane %v279_v8, 6 }
 0x4a7   :  { %v642_v21 = vpack.c.bf16 %v2792_v20, %v2792_v20  ;;  %v317_v16 = vsel %vm155_vm1, %v316_v13, %v299_v12 }
 0x4a8   :  { %v318_v19 = vsel %vm157_vm2, %v317_v16, %v302_v15 }
 0x4a9   :  { %644 = vrot.lane.b32.xlu1 %v642_v21, %s2612_s0  ;;  %v291_v21 = vld [vmem:[%s290_s29] sm:$0x1]  ;;  %v319_v23 = vsel %vm159_vm3, %v318_v19, %v305_v18  ;;  %s336_s29 = scalar_lea.vmem %s3360_s1, %s2061_s7  ;;  %s2066_s7 = sld [smem:[#allocation3 + $0x29]] }
 0x4aa   :  { %v311_v25 = vrot.slane %v291_v21, 2 }
 0x51b   :  { %v645_v22 = vpop.permute.xlu1 %644 }
 0x51c   :  { %2204 = vmatmul.mubr.msk.bf16.vlgmr.msra.gmra.mxu1 %vm572_vm11, %v645_v22 }
 0x51d   :  { %2216 = vmatpush3.bf16.msra.mxu1 %v2721_v36  ;;  %2219 = vmatprep.mubr.msk.bf16.mxu1 %vm2614_vm10, %v2613_v37 }
 0x51e   :  { %2217 = vmatprep.subr.bf16.mxu1 %v2613_v37 }
 0x521   :  { %2218 = vmatpush3.bf16.msra.mxu1 %v2727_v38 }
 0x522   :  { %2231 = vmatprep.subr.bf16.mxu1 %v2613_v37 }
 0x5dc   :  { %v683_v50 = vpop.f32.mrf.mxu1 }
 0x5dd   :  { %v689_v51 = vadd.f32 %v683_v50, %v270_v49 }
 0x5de   :  { %v2205_v52 = vpop.f32.mrf.mxu1 }
 0x5df   :  { %v2095_v53 = vmul.f32 -1.442695, %v689_v51 }
 0x5e0   :  { %v686_v54 = vpop.f32.mrf.mxu1 }
 0x5e1   :  { %2361 = vpow2.f32 %v2095_v53 }
 0x5e2   :  { %v2206_v55 = vpop.f32.mrf.mxu1  ;;  %2363 = vtanh.f32 %v689_v51 }
 0x5ee   :  { %v2362_v56 = vpop.eup %2361 }
 0x5ef   :  { %v693_v57 = vadd.f32 1.0, %v2362_v56  ;;  %v2364_v58 = vpop.eup %2363  ;;  %v328_v56 = vld [vmem:[%s327_s17] sm:$0x1]  ;;  %s345_s17 = scalar_lea.vmem %s3360_s1, %s2064_s30 }
 0x5f0   :  { %v346_v9 = vld [vmem:[%s345_s17] sm:$0x1]  ;;  %s2078_s17 = sld [smem:[#allocation3 + $0x35]] }
 0x5f1   :  { %2365 = vrcp.f32 %v693_v57  ;;  %v331_v57 = vld [vmem:[%s330_s20] sm:$0x1]  ;;  %v366_v12 = vrot.slane %v346_v9, 1  ;;  %s2068_s20 = sld [smem:[#allocation3 + $0x2b]] }
 0x5f7   :  { %s385_s5 = scalar_lea.vmem %s3360_s1, %s2068_s20 }
 0x5fe   :  { %v2366_v59 = vpop.eup %2365 }
 0x5ff   :  { %v697_v60 = vsel %vm2710_vm9, %v2364_v58, %v2366_v59  ;;  %v348_v58 = vrot.slane %v328_v56, 7  ;;  %v325_v59 = vld [vmem:[%s324_s23] sm:$0x1]  ;;  %s379_s23 = scalar_lea.vmem %s3360_s1, %s2066_s7 }
 0x600   :  { %700 = vrot.lane.b32.xlu0 %v697_v60, %s2608_s14  ;;  %v698_v63 = vmul.f32 %v697_v60, %v2788_v17  ;;  %v288_v17 = vld [vmem:[%s287_s27] sm:$0x1]  ;;  %s2063_s27 = sld [smem:[#allocation3 + $0x26]] }
 0x601   :  { %v308_v22 = vrot.slane %v288_v17, 3 }
 0x603   :  { %v320_v26 = vsel %vm161_vm4, %v319_v23, %v308_v22 }
 0x604   :  { %v321_v29 = vsel %vm163_vm5, %v320_v26, %v311_v25 }
 0x605   :  { %v322_v30 = vsel %vm165_vm6, %v321_v29, %v314_v27 }
 0x606   :  { %s342_s13 = scalar_lea.vmem %s3360_s1, %s2063_s27  ;;  %s2074_s27 = sld [smem:[#allocation3 + $0x31]] }
 0x60c   :  { %s431_s9 = scalar_lea.vmem %s3360_s1, %s2074_s27 }
 0x672   :  { %v701_v61 = vpop.permute.xlu0 %700 }
 0x673   :  { %v703_v62 = vmul.f32 %v701_v61, %v697_v60  ;;  %v351_v61 = vrot.slane %v331_v57, 6 }
 0x675   :  { %705 = vrot.lane.b32.xlu1 %v703_v62, %s2612_s0  ;;  %v368_v62 = vsel %vm153_vm0, %v325_v59, %v348_v58 }
 0x6e7   :  { %v706_v0 = vpop.permute.xlu1 %705 }
 0x6e8   :  { %v2840_v1 = vadd.f32 %v706_v0, %v698_v63  ;;  %v337_v63 = vld [vmem:[%s336_s29] sm:$0x1]  ;;  %s2070_s29 = sld [smem:[#allocation3 + $0x2d]] }
 0x6ea   :  { %2367 = vtanh.f32 %v2840_v1 }
 0x6ee   :  { %s391_s7 = scalar_lea.vmem %s3360_s1, %s2070_s29  ;;  %s2076_s29 = sld [smem:[#allocation3 + $0x33]] }
 0x6f4   :  { %s437_s19 = scalar_lea.vmem %s3360_s1, %s2076_s29 }
 0x6f7   :  { %v2368_v2 = vpop.eup %2367 }
 0x6f8   :  { %711 = vrot.lane.b32.xlu0 %v2368_v2, %s2608_s14  ;;  %v340_v2 = vld [vmem:[%s339_s10] sm:$0x1]  ;;  %s2071_s10 = sld [smem:[#allocation3 + $0x2e]] }
 0x6f9   :  { %v360_v7 = vrot.slane %v340_v2, 3 }
 0x6fe   :  { %s394_s20 = scalar_lea.vmem %s3360_s1, %s2071_s10  ;;  %s2081_s10 = sld [smem:[#allocation3 + $0x38]] }
 0x704   :  { %s480_s21 = scalar_lea.vmem %s3360_s1, %s2081_s10  ;;  %s498_s10 = scalar_lea.vmem %s3360_s1, %s2087_s25 }
 0x76a   :  { %v712_v3 = vpop.permute.xlu0 %711 }
 0x76b   :  { %v2844_v4 = vmul.f32 %v712_v3, %v697_v60  ;;  %v334_v60 = vld [vmem:[%s333_s26] sm:$0x1]  ;;  %v357_v3 = vrot.slane %v337_v63, 4  ;;  %s382_s26 = scalar_lea.vmem %s3360_s1, %s2067_s18 }
 0x76c   :  { %v354_v0 = vrot.slane %v334_v60, 5 }
 0x76d   :  { %v715_v5 = vpack.c.bf16 %v2844_v4, %v2844_v4 }
 0x76f   :  { %717 = vrot.lane.b32.xlu1 %v715_v5, %s2612_s0 }
 0x7e1   :  { %v718_v6 = vpop.permute.xlu1 %717 }
 0x7e2   :  { %2212 = vmatmul.mubr.msk.bf16.vlgmr.msra.gmra.mxu0 %vm572_vm11, %v718_v6  ;;  %v343_v6 = vld [vmem:[%s342_s13] sm:$0x1]  ;;  %s388_s13 = scalar_lea.vmem %s3360_s1, %s2069_s24  ;;  %s2080_s24 = sld [smem:[#allocation3 + $0x37]] }
 0x7e3   :  { %2224 = vmatpush3.bf16.msra.mxu0 %v2721_v36  ;;  %2227 = vmatprep.mubr.msk.bf16.mxu0 %vm2614_vm10, %v2613_v37  ;;  %v363_v10 = vrot.slane %v343_v6, 2 }
 0x7e4   :  { %2225 = vmatprep.subr.bf16.mxu0 %v2613_v37 }
 0x7e7   :  { %2226 = vmatpush3.bf16.msra.mxu0 %v2727_v38 }
 0x7e8   :  { %2239 = vmatprep.subr.bf16.mxu0 %v2613_v37 }
 0x8a2   :  { %v756_v31 = vpop.f32.mrf.mxu0 }
 0x8a3   :  { %v762_v32 = vadd.f32 %v756_v31, %v322_v30 }
 0x8a4   :  { %v2213_v33 = vpop.f32.mrf.mxu0 }
 0x8a5   :  { %v2097_v34 = vmul.f32 -1.442695, %v762_v32 }
 0x8a6   :  { %v759_v35 = vpop.f32.mrf.mxu0 }
 0x8a7   :  { %2369 = vpow2.f32 %v2097_v34 }
 0x8a8   :  { %v2214_v39 = vpop.f32.mrf.mxu0  ;;  %2371 = vtanh.f32 %v762_v32 }
 0x8b4   :  { %v2370_v40 = vpop.eup %2369 }
 0x8b5   :  { %v766_v42 = vadd.f32 1.0, %v2370_v40  ;;  %v2372_v43 = vpop.eup %2371 }
 0x8b7   :  { %2373 = vrcp.f32 %v766_v42  ;;  %v380_v42 = vld [vmem:[%s379_s23] sm:$0x1]  ;;  %s397_s23 = scalar_lea.vmem %s3360_s1, %s2072_s15 }
 0x8b8   :  { %v398_v57 = vld [vmem:[%s397_s23] sm:$0x1] }
 0x8b9   :  { %v418_v60 = vrot.slane %v398_v57, 1 }
 0x8c4   :  { %v2374_v44 = vpop.eup %2373 }
 0x8c5   :  { %v770_v45 = vsel %vm2710_vm9, %v2372_v43, %v2374_v44  ;;  %v377_v43 = vld [vmem:[%s376_s2] sm:$0x1]  ;;  %s2073_s2 = sld [smem:[#allocation3 + $0x30]] }
 0x8c6   :  { %773 = vrot.lane.b32.xlu0 %v770_v45, %s2608_s14  ;;  %v771_v48 = vmul.f32 %v770_v45, %v2840_v1  ;;  %v369_v1 = vsel %vm155_vm1, %v368_v62, %v351_v61  ;;  %v386_v44 = vld [vmem:[%s385_s5] sm:$0x1]  ;;  %s2077_s5 = sld [smem:[#allocation3 + $0x34]] }
 0x8c7   :  { %v370_v5 = vsel %vm157_vm2, %v369_v1, %v354_v0 }
 0x8c8   :  { %v371_v8 = vsel %vm159_vm3, %v370_v5, %v357_v3 }
 0x8c9   :  { %v372_v11 = vsel %vm161_vm4, %v371_v8, %v360_v7 }
 0x8ca   :  { %v373_v13 = vsel %vm163_vm5, %v372_v11, %v363_v10 }
 0x8cb   :  { %v374_v14 = vsel %vm165_vm6, %v373_v13, %v366_v12  ;;  %s428_s16 = scalar_lea.vmem %s3360_s1, %s2073_s2 }
 0x8cc   :  { %s440_s23 = scalar_lea.vmem %s3360_s1, %s2077_s5  ;;  %s2083_s5 = sld [smem:[#allocation3 + $0x3a]] }
 0x8d2   :  { %s486_s18 = scalar_lea.vmem %s3360_s1, %s2083_s5 }
 0x938   :  { %v774_v46 = vpop.permute.xlu0 %773 }
 0x939   :  { %v776_v47 = vmul.f32 %v774_v46, %v770_v45 }
 0x93b   :  { %778 = vrot.lane.b32.xlu1 %v776_v47, %s2612_s0  ;;  %v389_v47 = vld [vmem:[%s388_s13] sm:$0x1] }
 0x9ad   :  { %v779_v49 = vpop.permute.xlu1 %778 }
 0x9ae   :  { %v2892_v50 = vadd.f32 %v779_v49, %v771_v48  ;;  %v406_v48 = vrot.slane %v386_v44, 5 }
 0x9b0   :  { %2375 = vtanh.f32 %v2892_v50 }
 0x9bd   :  { %v2376_v51 = vpop.eup %2375 }
 0x9be   :  { %784 = vrot.lane.b32.xlu0 %v2376_v51, %s2608_s14  ;;  %v409_v51 = vrot.slane %v389_v47, 4 }
 0xa30   :  { %v785_v52 = vpop.permute.xlu0 %784 }
 0xa31   :  { %v2896_v53 = vmul.f32 %v785_v52, %v770_v45 }
 0xa33   :  { %v788_v54 = vpack.c.bf16 %v2896_v53, %v2896_v53 }
 0xa35   :  { %790 = vrot.lane.b32.xlu1 %v788_v54, %s2612_s0  ;;  %v395_v54 = vld [vmem:[%s394_s20] sm:$0x1]  ;;  %s2079_s20 = sld [smem:[#allocation3 + $0x36]] }
 0xa36   :  { %v415_v58 = vrot.slane %v395_v54, 2 }
 0xa3b   :  { %s446_s2 = scalar_lea.vmem %s3360_s1, %s2079_s20 }
 0xaa7   :  { %v791_v55 = vpop.permute.xlu1 %790 }
 0xaa8   :  { %2220 = vmatmul.mubr.msk.bf16.vlgmr.msra.gmra.mxu1 %vm572_vm11, %v791_v55 }
 0xaa9   :  { %2232 = vmatpush3.bf16.msra.mxu1 %v2721_v36  ;;  %2235 = vmatprep.mubr.msk.bf16.mxu1 %vm2614_vm10, %v2613_v37 }
 0xaaa   :  { %2233 = vmatprep.subr.bf16.mxu1 %v2613_v37 }
 0xaad   :  { %2234 = vmatpush3.bf16.msra.mxu1 %v2727_v38 }
 0xb68   :  { %v829_v15 = vpop.f32.mrf.mxu1 }
 0xb69   :  { %v835_v16 = vadd.f32 %v829_v15, %v374_v14 }
 0xb6a   :  { %v2221_v17 = vpop.f32.mrf.mxu1 }
 0xb6b   :  { %v2099_v18 = vmul.f32 -1.442695, %v835_v16 }
 0xb6c   :  { %v832_v19 = vpop.f32.mrf.mxu1 }
 0xb6d   :  { %2377 = vpow2.f32 %v2099_v18  ;;  %v1080_v18 = vpack.c.bf16 %v2792_v20, %v2740_v41 }
 0xb6e   :  { %v2222_v21 = vpop.f32.mrf.mxu1  ;;  %2379 = vtanh.f32 %v835_v16  ;;  %v2339_v16 = vld [vmem:[%s3362_s3 + $0x8] sm:$0xff]  }
 0xb6f   :  { %2247 = vmatprep.subr.bf16.mxu1 %v2339_v16 }
 0xb7a   :  { %v2378_v22 = vpop.eup %2377 }
 0xb7b   :  { %v839_v23 = vadd.f32 1.0, %v2378_v22  ;;  %v2380_v24 = vpop.eup %2379 }
 0xb7d   :  { %2381 = vrcp.f32 %v839_v23  ;;  %v1081_v23 = vpack.c.bf16 %v2896_v53, %v2844_v4  ;;  %v432_v4 = vld [vmem:[%s431_s9] sm:$0x1]  ;;  %s2082_s9 = sld [smem:[#allocation3 + $0x39]] }
 0xb7e   :  { %v435_v53 = vld [vmem:[%s434_s12] sm:$0x1] }
 0xb83   :  { %s483_s15 = scalar_lea.vmem %s3360_s1, %s2082_s9 }
 0xb8a   :  { %v2382_v25 = vpop.eup %2381 }
 0xb8b   :  { %v843_v26 = vsel %vm2710_vm9, %v2380_v24, %v2382_v25  ;;  %v2340_v24 = vld [vmem:[%s3362_s3] sm:$0xff]   ;;  %s449_s3 = scalar_lea.vmem %s3360_s1, %s2080_s24 }
 0xb8c   :  { %846 = vrot.lane.b32.xlu0 %v843_v26, %s2608_s14  ;;  %v844_v30 = vmul.f32 %v843_v26, %v2892_v50  ;;  %v392_v50 = vld [vmem:[%s391_s7] sm:$0x1] }
 0xb8d   :  { %v412_v55 = vrot.slane %v392_v50, 3  ;;  %v450_v44 = vld [vmem:[%s449_s3] sm:$0x1]  ;;  %s495_s3 = scalar_lea.vmem %s3360_s1, %s2086_s22 }
 0xb8e   :  { %v470_v47 = vrot.slane %v450_v44, 1 }
 0xbfe   :  { %v847_v27 = vpop.permute.xlu0 %846 }
 0xbff   :  { %v849_v29 = vmul.f32 %v847_v27, %v843_v26  ;;  %v429_v27 = vld [vmem:[%s428_s16] sm:$0x1]  ;;  %s2085_s16 = sld [smem:[#allocation3 + $0x3c]] }
 0xc01   :  { %851 = vrot.lane.b32.xlu1 %v849_v29, %s2612_s0  ;;  %v438_v29 = vld [vmem:[%s437_s19] sm:$0x1] }
 0xc05   :  { %s492_s28 = scalar_lea.vmem %s3360_s1, %s2085_s16 }
 0xc73   :  { %v852_v31 = vpop.permute.xlu1 %851 }
 0xc74   :  { %v2943_v32 = vadd.f32 %v852_v31, %v844_v30  ;;  %v455_v30 = vrot.slane %v435_v53, 6 }
 0xc76   :  { %2383 = vtanh.f32 %v2943_v32 }
 0xc83   :  { %v2384_v33 = vpop.eup %2383 }
 0xc84   :  { %857 = vrot.lane.b32.xlu0 %v2384_v33, %s2608_s14  ;;  %v458_v33 = vrot.slane %v438_v29, 5 }
 0xcf6   :  { %v858_v34 = vpop.permute.xlu0 %857 }
 0xcf7   :  { %v2947_v35 = vmul.f32 %v858_v34, %v843_v26  ;;  %v452_v26 = vrot.slane %v432_v4, 7 }
 0xcf9   :  { %v861_v39 = vpack.c.bf16 %v2947_v35, %v2947_v35  ;;  %v472_v31 = vsel %vm153_vm0, %v429_v27, %v452_v26 }
 0xcfa   :  { %v473_v34 = vsel %vm155_vm1, %v472_v31, %v455_v30 }
 0xcfb   :  { %863 = vrot.lane.b32.xlu1 %v861_v39, %s2612_s0 }
 0xd6d   :  { %v864_v40 = vpop.permute.xlu1 %863 }
 0xd6e   :  { %2228 = vmatmul.mubr.msk.bf16.vlgmr.msra.gmra.mxu0 %vm572_vm11, %v864_v40 }
 0xd6f   :  { %2240 = vmatpush3.bf16.msra.mxu0 %v2721_v36  ;;  %2243 = vmatprep.mubr.msk.bf16.mxu0 %vm2614_vm10, %v2613_v37  ;;  %v383_v36 = vld [vmem:[%s382_s26] sm:$0x1]  ;;  %s443_s26 = scalar_lea.vmem %s3360_s1, %s2078_s17 }
 0xd70   :  { %2241 = vmatprep.subr.bf16.mxu0 %v2613_v37  ;;  %v403_v45 = vrot.slane %v383_v36, 6  ;;  %v444_v39 = vld [vmem:[%s443_s26] sm:$0x1] }
 0xd71   :  { %v447_v36 = vld [vmem:[%s446_s2] sm:$0x1]  ;;  %s2088_s2 = sld [smem:[#allocation3 + $0x3f]] }
 0xd73   :  { %2242 = vmatpush3.bf16.msra.mxu0 %v2727_v38  ;;  %v400_v38 = vrot.slane %v380_v42, 7  ;;  %v474_v42 = vsel %vm157_vm2, %v473_v34, %v458_v33 }
 0xd74   :  { %2259 = vmatprep.subr.bf16.mxu0 %v2613_v37 }
 0xd75   :  { %v420_v46 = vsel %vm153_vm0, %v377_v43, %v400_v38  ;;  %v464_v38 = vrot.slane %v444_v39, 3 }
 0xd76   :  { %v421_v49 = vsel %vm155_vm1, %v420_v46, %v403_v45  ;;  %v467_v45 = vrot.slane %v447_v36, 2 }
 0xd77   :  { %v422_v52 = vsel %vm157_vm2, %v421_v49, %v406_v48  ;;  %s501_s13 = scalar_lea.vmem %s3360_s1, %s2088_s2 }
 0xd78   :  { %v423_v56 = vsel %vm159_vm3, %v422_v52, %v409_v51 }
 0xd79   :  { %v424_v59 = vsel %vm161_vm4, %v423_v56, %v412_v55 }
 0xd7a   :  { %v425_v61 = vsel %vm163_vm5, %v424_v59, %v415_v58  ;;  %v3053_v58 = vld [vmem:[#allocation8] ss:$0 sm:$0xff] }
 0xd7b   :  { %v426_v62 = vsel %vm165_vm6, %v425_v61, %v418_v60 }
 0xe2e   :  { %v902_v63 = vpop.f32.mrf.mxu0 }
 0xe2f   :  { %v908_v0 = vadd.f32 %v902_v63, %v426_v62 }
 0xe30   :  { %v2229_v1 = vpop.f32.mrf.mxu0 }
 0xe31   :  { %v2101_v2 = vmul.f32 -1.442695, %v908_v0 }
 0xe32   :  { %v905_v3 = vpop.f32.mrf.mxu0 }
 0xe33   :  { %2385 = vpow2.f32 %v2101_v2 }
 0xe34   :  { %v2230_v5 = vpop.f32.mrf.mxu0  ;;  %2387 = vtanh.f32 %v908_v0 }
 0xe40   :  { %v2386_v6 = vpop.eup %2385 }
 0xe41   :  { %v912_v7 = vadd.f32 1.0, %v2386_v6  ;;  %v2388_v8 = vpop.eup %2387 }
 0xe43   :  { %2389 = vrcp.f32 %v912_v7 }
 0xe50   :  { %v2390_v9 = vpop.eup %2389 }
 0xe51   :  { %v916_v10 = vsel %vm2710_vm9, %v2388_v8, %v2390_v9 }
 0xe52   :  { %919 = vrot.lane.b32.xlu0 %v916_v10, %s2608_s14  ;;  %v917_v13 = vmul.f32 %v916_v10, %v2943_v32  ;;  %v441_v32 = vld [vmem:[%s440_s23] sm:$0x1] }
 0xe53   :  { %v461_v40 = vrot.slane %v441_v32, 4 }
 0xe55   :  { %v475_v43 = vsel %vm159_vm3, %v474_v42, %v461_v40 }
 0xe56   :  { %v476_v46 = vsel %vm161_vm4, %v475_v43, %v464_v38 }
 0xe57   :  { %v477_v48 = vsel %vm163_vm5, %v476_v46, %v467_v45 }
 0xe58   :  { %v478_v49 = vsel %vm165_vm6, %v477_v48, %v470_v47 }
 0xec4   :  { %v920_v11 = vpop.permute.xlu0 %919 }
 0xec5   :  { %v922_v12 = vmul.f32 %v920_v11, %v916_v10 }
 0xec7   :  { %924 = vrot.lane.b32.xlu1 %v922_v12, %s2612_s0 }
 0xf39   :  { %v925_v14 = vpop.permute.xlu1 %924 }
 0xf3a   :  { %v2995_v15 = vadd.f32 %v925_v14, %v917_v13 }
 0xf3c   :  { %2391 = vtanh.f32 %v2995_v15 }
 0xf49   :  { %v2392_v17 = vpop.eup %2391 }
 0xf4a   :  { %930 = vrot.lane.b32.xlu0 %v2392_v17, %s2608_s14 }
 0xf4e   :  { %1094 = vrot.lane.b32.xlu0 %v1080_v18, %s2612_s0 }
 0xfbc   :  { %v931_v19 = vpop.permute.xlu0 %930 }
 0xfbd   :  { %v3005_v21 = vmul.f32 %v931_v19, %v916_v10 }
 0xfbf   :  { %v934_v22 = vpack.c.bf16 %v3005_v21, %v3005_v21 }
 0xfc0   :  { %v1095_v20 = vpop.permute.xlu0 %1094 }
 0xfc1   :  { %936 = vrot.lane.b32.xlu1 %v934_v22, %s2612_s0 }
 0xfc5   :  { %1096 = vrot.lane.b32.xlu1 %v1081_v23, %s2612_s0 }
0x1033   :  { %v937_v41 = vpop.permute.xlu1 %936 }
0x1034   :  { %2236 = vmatmul.mubr.msk.bf16.vlgmr.msra.gmra.mxu1 %vm572_vm11, %v937_v41 }
0x1035   :  { %2248 = vmatpush3.bf16.msra.mxu1 %v2339_v16  ;;  %2251 = vmatprep.mubr.msk.bf16.mxu1 %vm572_vm11, %v1095_v20 }
0x1036   :  { %2249 = vmatprep.subr.bf16.mxu1 %v2340_v24 }
0x1037   :  { %v1097_v25 = vpop.permute.xlu1 %1096 }
0x1039   :  { %2250 = vmatpush3.bf16.msra.mxu1 %v2340_v24  ;;  %v3073_v24 = vld [vmem:[#allocation6 + $0x8] sm:$0xff]  }
0x103a   :  { %2275 = vmatprep.subr.bf16.mxu1 %v2613_v37 }
0x103c   :  { %2252 = vmatmul.mubr.msk.bf16.vlgmr.msra.gmra.mxu1 %vm572_vm11, %v1097_v25 }
0x103d   :  { %2276 = vmatpush3.bf16.msra.mxu1 %v3073_v24 }
0x103e   :  { %2277 = vmatprep.subr.bf16.mxu1 %v2613_v37 }
0x10f4   :  { %v975_v50 = vpop.f32.mrf.mxu1 }
0x10f5   :  { %v981_v51 = vadd.f32 %v975_v50, %v478_v49 }
0x10f6   :  { %v2237_v52 = vpop.f32.mrf.mxu1 }
0x10f7   :  { %v2103_v54 = vmul.f32 -1.442695, %v981_v51 }
0x10f8   :  { %v978_v55 = vpop.f32.mrf.mxu1 }
0x10f9   :  { %2393 = vpow2.f32 %v2103_v54  ;;  %v484_v54 = vld [vmem:[%s483_s15] sm:$0x1] }
0x10fa   :  { %v2238_v56 = vpop.f32.mrf.mxu1  ;;  %v487_v55 = vld [vmem:[%s486_s18] sm:$0x1] }
0x10fb   :  { %v504_v56 = vrot.slane %v484_v54, 7 }
0x10fc   :  { %v3051_v57 = vpop.f32.mrf.mxu1 }
0x10fe   :  { %v1160_v59 = vpop.f32.mrf.mxu1 }
0x10ff   :  { %v1161_v60 = vadd.f32 %v3053_v58, %v1160_v59  ;;  %v481_v59 = vld [vmem:[%s480_s21] sm:$0x1] }
0x1100   :  { %v3107_v31 = vpop.f32.mrf.mxu1 }
0x1101   :  { %v2113_v61 = vmul.f32 -1.442695, %v1161_v60 }
0x1102   :  { %v1163_v34 = vpop.f32.mrf.mxu1 }
0x1103   :  { %2395 = vpow2.f32 %v2113_v61  ;;  %v1164_v40 = vadd.f32 %v3053_v58, %v1163_v34  ;;  %v507_v61 = vrot.slane %v487_v55, 6 }
0x1104   :  { %2397 = vtanh.f32 %v981_v51 }
0x1106   :  { %v2394_v62 = vpop.eup %2393 }
0x1107   :  { %v985_v63 = vadd.f32 1.0, %v2394_v62  ;;  %v524_v62 = vsel %vm153_vm0, %v481_v59, %v504_v56 }
0x1109   :  { %2399 = vrcp.f32 %v985_v63  ;;  %v493_v63 = vld [vmem:[%s492_s28] sm:$0x1] }
0x110a   :  { %2401 = vtanh.f32 %v1161_v60  ;;  %v490_v60 = vld [vmem:[%s489_s4] sm:$0x1] }
0x1110   :  { %v2396_v0 = vpop.eup %2395 }
0x1111   :  { %v1194_v1 = vadd.f32 1.0, %v2396_v0  ;;  %v2398_v2 = vpop.eup %2397  ;;  %v510_v0 = vrot.slane %v490_v60, 5 }
0x1113   :  { %2403 = vrcp.f32 %v1194_v1  ;;  %v525_v1 = vsel %vm155_vm1, %v524_v62, %v507_v61 }
0x1116   :  { %v2400_v3 = vpop.eup %2399 }
0x1117   :  { %v989_v5 = vsel %vm2710_vm9, %v2398_v2, %v2400_v3  ;;  %v2402_v6 = vpop.eup %2401  ;;  %v496_v2 = vld [vmem:[%s495_s3] sm:$0x1]  ;;  %v513_v3 = vrot.slane %v493_v63, 4 }
0x1118   :  { %992 = vrot.lane.b32.xlu0 %v989_v5, %s2608_s14  ;;  %v990_v13 = vmul.f32 %v989_v5, %v2995_v15  ;;  %v3077_v15 = vld [vmem:[#allocation6] sm:$0xff]  }
0x1119   :  { %2278 = vmatpush3.bf16.msra.mxu1 %v3077_v15 }
0x111a   :  { %2291 = vmatprep.subr.bf16.mxu1 %v2613_v37 }
0x1120   :  { %v2404_v7 = vpop.eup %2403 }
0x1121   :  { %v1198_v8 = vsel %vm2710_vm9, %v2402_v6, %v2404_v7  ;;  %v499_v6 = vld [vmem:[%s498_s10] sm:$0x1]  ;;  %v516_v7 = vrot.slane %v496_v2, 3 }
0x1122   :  { %1201 = vrot.lane.b32.xlu1 %v1198_v8, %s2608_s14  ;;  %v1199_v17 = vmul.f32 0.0, %v1198_v8 }
0x118a   :  { %v993_v9 = vpop.permute.xlu0 %992 }
0x118b   :  { %v995_v10 = vmul.f32 %v993_v9, %v989_v5  ;;  %v502_v9 = vld [vmem:[%s501_s13] sm:$0x1] }
0x118d   :  { %997 = vrot.lane.b32.xlu0 %v995_v10, %s2612_s0  ;;  %v519_v10 = vrot.slane %v499_v6, 2 }
0x1194   :  { %v1202_v11 = vpop.permute.xlu1 %1201 }
0x1195   :  { %v1204_v12 = vmul.f32 %v1202_v11, %v1198_v8 }
0x1197   :  { %1206 = vrot.lane.b32.xlu1 %v1204_v12, %s2612_s0  ;;  %v522_v12 = vrot.slane %v502_v9, 1 }
0x11ff   :  { %v998_v14 = vpop.permute.xlu0 %997 }
0x1200   :  { %v3065_v16 = vadd.f32 %v998_v14, %v990_v13 }
0x1202   :  { %2405 = vtanh.f32 %v3065_v16 }
0x1209   :  { %v1207_v18 = vpop.permute.xlu1 %1206 }
0x120a   :  { %v3068_v19 = vadd.f32 %v1207_v18, %v1199_v17 }
0x120c   :  { %2407 = vtanh.f32 %v3068_v19 }
0x120f   :  { %v2406_v22 = vpop.eup %2405 }
0x1210   :  { %1003 = vrot.lane.b32.xlu0 %v2406_v22, %s2608_s14 }
0x1219   :  { %v2408_v23 = vpop.eup %2407 }
0x121a   :  { %1212 = vrot.lane.b32.xlu1 %v2408_v23, %s2608_s14 }
0x1282   :  { %v1004_v41 = vpop.permute.xlu0 %1003 }
0x1283   :  { %v3081_v20 = vmul.f32 %v1004_v41, %v989_v5  ;;  %v526_v5 = vsel %vm157_vm2, %v525_v1, %v510_v0 }
0x1285   :  { %v1007_v25 = vpack.c.bf16 %v3081_v20, %v3081_v20 }
0x1287   :  { %1009 = vrot.lane.b32.xlu0 %v1007_v25, %s2612_s0 }
0x128c   :  { %v1213_v4 = vpop.permute.xlu1 %1212 }
0x128d   :  { %v3086_v53 = vmul.f32 %v1213_v4, %v1198_v8  ;;  %v527_v8 = vsel %vm159_vm3, %v526_v5, %v513_v3 }
0x128e   :  { %v528_v11 = vsel %vm161_vm4, %v527_v8, %v516_v7 }
0x128f   :  { %v1216_v26 = vpack.c.bf16 %v3086_v53, %v3086_v53  ;;  %v529_v13 = vsel %vm163_vm5, %v528_v11, %v519_v10  ;;  %v1172_v11 = vadd.f32 %v3107_v31, %v3053_v58 }
0x1290   :  { %v530_v14 = vsel %vm165_vm6, %v529_v13, %v522_v12 }
0x1291   :  { %1218 = vrot.lane.b32.xlu1 %v1216_v26, %s2612_s0 }
0x12f9   :  { %v1010_v27 = vpop.permute.xlu0 %1009 }
0x12fa   :  { %2244 = vmatmul.mubr.msk.bf16.vlgmr.msra.gmra.mxu0 %vm572_vm11, %v1010_v27 }
0x12fb   :  { %2260 = vmatpush3.bf16.msra.mxu0 %v3073_v24  ;;  %2263 = vmatprep.mubr.msk.bf16.mxu0 %vm2614_vm10, %v2613_v37 }
0x12fc   :  { %2261 = vmatprep.subr.bf16.mxu0 %v2613_v37 }
0x12ff   :  { %2262 = vmatpush3.bf16.msra.mxu0 %v3077_v15 }
0x1300   :  { %2267 = vmatprep.subr.bf16.mxu0 %v2613_v37 }
0x1303   :  { %v1219_v29 = vpop.permute.xlu1 %1218 }
0x1304   :  { %2264 = vmatmul.mubr.msk.bf16.vlgmr.msra.gmra.mxu0 %vm572_vm11, %v1219_v29 }
0x1305   :  { %2268 = vmatpush3.bf16.msra.mxu0 %v3073_v24  ;;  %2271 = vmatprep.mubr.msk.bf16.mxu0 %vm2614_vm10, %v2613_v37 }
0x1306   :  { %2269 = vmatprep.subr.bf16.mxu0 %v2613_v37 }
0x1309   :  { %2270 = vmatpush3.bf16.msra.mxu0 %v3077_v15 }
0x130a   :  { %2283 = vmatprep.subr.bf16.mxu0 %v2613_v37 }
0x13ba   :  { %v3105_v30 = vpop.f32.mrf.mxu0 }
0x13bb   :  { %v1054_v17 = vadd.f32 %v3105_v30, %v530_v14 }
0x13bc   :  { %v2245_v32 = vpop.f32.mrf.mxu0 }
0x13bd   :  { %v2105_v18 = vmul.f32 -1.442695, %v1054_v17 }
0x13be   :  { %v1051_v33 = vpop.f32.mrf.mxu0 }
0x13c0   :  { %v2246_v39 = vpop.f32.mrf.mxu0 }
0x13c4   :  { %v1269_v42 = vpop.f32.mrf.mxu0 }
0x13c5   :  { %v1275_v36 = vadd.f32 %v1269_v42, %v1164_v40 }
0x13c6   :  { %v2265_v38 = vpop.f32.mrf.mxu0 }
0x13c7   :  { %v2117_v43 = vmul.f32 -1.442695, %v1275_v36 }
0x13c8   :  { %v1272_v44 = vpop.f32.mrf.mxu0 }
0x13c9   :  { %2409 = vpow2.f32 %v2117_v43 }
0x13ca   :  { %v2266_v45 = vpop.f32.mrf.mxu0  ;;  %2411 = vtanh.f32 %v1275_v36 }
0x13d6   :  { %v2410_v46 = vpop.eup %2409 }
0x13d7   :  { %v1279_v47 = vadd.f32 1.0, %v2410_v46  ;;  %v2412_v48 = vpop.eup %2411  ;;  %v1169_v46 = vadd.f32 %v3051_v57, %v3053_v58 }
0x13d9   :  { %2413 = vrcp.f32 %v1279_v47 }
0x13da   :  { %2415 = vpow2.f32 %v2105_v18 }
0x13e6   :  { %v2414_v49 = vpop.eup %2413 }
0x13e7   :  { %v1283_v50 = vsel %vm2710_vm9, %v2412_v48, %v2414_v49  ;;  %v2416_v22 = vpop.eup %2415 }
0x13e8   :  { %1286 = vrot.lane.b32.xlu0 %v1283_v50, %s2608_s14  ;;  %v1284_v23 = vmul.f32 %v1283_v50, %v3068_v19  ;;  %v1058_v41 = vadd.f32 1.0, %v2416_v22 }
0x145a   :  { %v1287_v51 = vpop.permute.xlu0 %1286 }
0x145b   :  { %v1289_v52 = vmul.f32 %v1287_v51, %v1283_v50 }
0x145d   :  { %1291 = vrot.lane.b32.xlu1 %v1289_v52, %s2612_s0 }
0x14cf   :  { %v1292_v25 = vpop.permute.xlu1 %1291 }
0x14d0   :  { %v1294_v4 = vadd.f32 %v1292_v25, %v1284_v23 }
0x14d2   :  { %2417 = vtanh.f32 %v1294_v4 }
0x14d3   :  { %2419 = vrcp.f32 %v1058_v41 }
0x14d4   :  { %2421 = vtanh.f32 %v1054_v17 }
0x14df   :  { %v2418_v26 = vpop.eup %2417 }
0x14e0   :  { %v2420_v27 = vpop.eup %2419  ;;  %1297 = vrot.lane.b32.xlu0 %v2418_v26, %s2608_s14 }
0x14e1   :  { %v2422_v29 = vpop.eup %2421 }
0x14e2   :  { %v1062_v32 = vsel %vm2710_vm9, %v2422_v29, %v2420_v27 }
0x14e3   :  { %v1063_v42 = vmul.f32 %v1062_v32, %v3065_v16  ;;  %v1082_v16 = vpack.c.bf16 %v3005_v21, %v2947_v35 }
0x14e4   :  { %1065 = vrot.lane.b32.xlu0 %v1062_v32, %s2608_s14 }
0x1552   :  { %v1298_v30 = vpop.permute.xlu0 %1297 }
0x1553   :  { %v3151_v33 = vmul.f32 %v1298_v30, %v1283_v50 }
0x1555   :  { %v1301_v19 = vpack.c.bf16 %v3151_v33, %v3151_v33 }
0x1556   :  { %v1066_v34 = vpop.permute.xlu0 %1065 }
0x1557   :  { %v1068_v39 = vmul.f32 %v1066_v34, %v1062_v32  ;;  %1303 = vrot.lane.b32.xlu1 %v1301_v19, %s2612_s0 }
0x1559   :  { %1070 = vrot.lane.b32.xlu0 %v1068_v39, %s2612_s0 }
0x15c9   :  { %v1304_v40 = vpop.permute.xlu1 %1303 }
0x15ca   :  { %2272 = vmatmul.mubr.msk.bf16.vlgmr.msra.gmra.mxu0 %vm572_vm11, %v1304_v40 }
0x15cb   :  { %v1071_v36 = vpop.permute.xlu0 %1070  ;;  %2284 = vmatpush3.bf16.msra.mxu0 %v3073_v24  ;;  %2287 = vmatprep.mubr.msk.bf16.mxu0 %vm2614_vm10, %v2613_v37 }
0x15cc   :  { %v1073_v38 = vadd.f32 %v1071_v36, %v1063_v42  ;;  %2285 = vmatprep.subr.bf16.mxu0 %v2613_v37 }
0x15ce   :  { %2423 = vtanh.f32 %v1073_v38 }
0x15cf   :  { %2286 = vmatpush3.bf16.msra.mxu0 %v3077_v15 }
0x15d0   :  { %2299 = vmatprep.subr.bf16.mxu0 %v2613_v37 }
0x15db   :  { %v2424_v43 = vpop.eup %2423 }
0x15dc   :  { %1076 = vrot.lane.b32.xlu0 %v2424_v43, %s2608_s14 }
0x15e0   :  { %1098 = vrot.lane.b32.xlu0 %v1082_v16, %s2612_s0 }
0x164e   :  { %v1077_v44 = vpop.permute.xlu0 %1076 }
0x164f   :  { %v1079_v63 = vmul.f32 %v1077_v44, %v1062_v32 }
0x1651   :  { %v1083_v1 = vpack.c.bf16 %v1079_v63, %v3081_v20 }
0x1652   :  { %v1099_v45 = vpop.permute.xlu0 %1098 }
0x1653   :  { %2255 = vmatprep.mubr.msk.bf16.mxu1 %vm572_vm11, %v1099_v45 }
0x168a   :  { %v1342_v47 = vpop.f32.mrf.mxu0 }
0x168b   :  { %v1348_v48 = vadd.f32 %v1342_v47, %v1169_v46 }
0x168c   :  { %v2273_v49 = vpop.f32.mrf.mxu0 }
0x168d   :  { %v2119_v50 = vmul.f32 -1.442695, %v1348_v48 }
0x168e   :  { %v1345_v51 = vpop.f32.mrf.mxu0 }
0x168f   :  { %2425 = vpow2.f32 %v2119_v50 }
0x1690   :  { %v2274_v52 = vpop.f32.mrf.mxu0  ;;  %2427 = vtanh.f32 %v1348_v48 }
0x169c   :  { %v2426_v54 = vpop.eup %2425 }
0x169d   :  { %v1352_v55 = vadd.f32 1.0, %v2426_v54  ;;  %v2428_v35 = vpop.eup %2427 }
0x169f   :  { %2429 = vrcp.f32 %v1352_v55 }
0x16ac   :  { %v2430_v21 = vpop.eup %2429 }
0x16ad   :  { %v1356_v56 = vsel %vm2710_vm9, %v2428_v35, %v2430_v21 }
0x16ae   :  { %1359 = vrot.lane.b32.xlu1 %v1356_v56, %s2608_s14  ;;  %v1357_v60 = vmul.f32 %v1356_v56, %v1294_v4 }
0x1720   :  { %v1360_v59 = vpop.permute.xlu1 %1359 }
0x1721   :  { %v1362_v57 = vmul.f32 %v1360_v59, %v1356_v56 }
0x1723   :  { %1364 = vrot.lane.b32.xlu1 %v1362_v57, %s2612_s0 }
0x1795   :  { %v1365_v61 = vpop.permute.xlu1 %1364 }
0x1796   :  { %v1367_v62 = vadd.f32 %v1365_v61, %v1357_v60 }
0x1798   :  { %2431 = vtanh.f32 %v1367_v62 }
0x17a5   :  { %v2432_v0 = vpop.eup %2431 }
0x17a6   :  { %1370 = vrot.lane.b32.xlu1 %v2432_v0, %s2608_s14 }
0x17aa   :  { %1100 = vrot.lane.b32.xlu1 %v1083_v1, %s2612_s0 }
0x1818   :  { %v1371_v2 = vpop.permute.xlu1 %1370 }
0x1819   :  { %v3179_v3 = vmul.f32 %v1371_v2, %v1356_v56 }
0x181b   :  { %v1374_v5 = vpack.c.bf16 %v3179_v3, %v3179_v3 }
0x181c   :  { %v1101_v6 = vpop.permute.xlu1 %1100 }
0x181d   :  { %1376 = vrot.lane.b32.xlu0 %v1374_v5, %s2612_s0  ;;  %2256 = vmatmul.mubr.msk.bf16.gmra.mxu1 %vm572_vm11, %v1101_v6 }
0x181e   :  { %2279 = vmatprep.mubr.msk.bf16.mxu1 %vm2614_vm10, %v2613_v37 }
0x188f   :  { %v1377_v7 = vpop.permute.xlu0 %1376 }
0x1890   :  { %2280 = vmatmul.mubr.msk.bf16.vlgmr.msra.gmra.mxu1 %vm572_vm11, %v1377_v7 }
0x1891   :  { %2292 = vmatpush3.bf16.msra.mxu1 %v3073_v24  ;;  %2295 = vmatprep.mubr.msk.bf16.mxu1 %vm2614_vm10, %v2613_v37 }
0x1892   :  { %2293 = vmatprep.subr.bf16.mxu1 %v2613_v37 }
0x1895   :  { %2294 = vmatpush3.bf16.msra.mxu1 %v3077_v15 }
0x1896   :  { %2307 = vmatprep.subr.bf16.mxu1 %v2613_v37 }
0x18dd   :  { %v3194_v20 = vpop.f32.mrf.mxu1 }
0x18df   :  { %v1176_v8 = vpop.f32.mrf.mxu1 }
0x18e0   :  { %v1177_v36 = vadd.f32 %v3053_v58, %v1176_v8 }
0x18e1   :  { %v3196_v9 = vpop.f32.mrf.mxu1 }
0x18e3   :  { %v3198_v10 = vpop.f32.mrf.mxu1 }
0x1950   :  { %v1415_v12 = vpop.f32.mrf.mxu1 }
0x1951   :  { %v1421_v13 = vadd.f32 %v1415_v12, %v1172_v11 }
0x1952   :  { %v2281_v14 = vpop.f32.mrf.mxu1 }
0x1953   :  { %v2121_v17 = vmul.f32 -1.442695, %v1421_v13 }
0x1954   :  { %v1418_v18 = vpop.f32.mrf.mxu1 }
0x1955   :  { %2433 = vpow2.f32 %v2121_v17 }
0x1956   :  { %v2282_v22 = vpop.f32.mrf.mxu1  ;;  %2435 = vtanh.f32 %v1421_v13 }
0x1962   :  { %v2434_v23 = vpop.eup %2433 }
0x1963   :  { %v1425_v41 = vadd.f32 1.0, %v2434_v23  ;;  %v2436_v25 = vpop.eup %2435 }
0x1965   :  { %2437 = vrcp.f32 %v1425_v41 }
0x1972   :  { %v2438_v4 = vpop.eup %2437 }
0x1973   :  { %v1429_v26 = vsel %vm2710_vm9, %v2436_v25, %v2438_v4  ;;  %v1185_v25 = vadd.f32 %v3194_v20, %v3053_v58 }
0x1974   :  { %1432 = vrot.lane.b32.xlu1 %v1429_v26, %s2608_s14  ;;  %v1430_v29 = vmul.f32 %v1429_v26, %v1367_v62  ;;  %v1180_v62 = vadd.f32 %v3053_v58, %v3198_v10 }
0x19e6   :  { %v1433_v27 = vpop.permute.xlu1 %1432 }
0x19e7   :  { %v1435_v31 = vmul.f32 %v1433_v27, %v1429_v26 }
0x19e9   :  { %1437 = vrot.lane.b32.xlu0 %v1435_v31, %s2612_s0 }
0x1a5b   :  { %v1438_v32 = vpop.permute.xlu0 %1437 }
0x1a5c   :  { %v1440_v30 = vadd.f32 %v1438_v32, %v1430_v29 }
0x1a5e   :  { %2439 = vtanh.f32 %v1440_v30 }
0x1a6b   :  { %v2440_v19 = vpop.eup %2439 }
0x1a6c   :  { %1443 = vrot.lane.b32.xlu1 %v2440_v19, %s2608_s14 }
0x1ade   :  { %v1444_v34 = vpop.permute.xlu1 %1443 }
0x1adf   :  { %v3207_v39 = vmul.f32 %v1444_v34, %v1429_v26 }
0x1ae1   :  { %v1447_v40 = vpack.c.bf16 %v3207_v39, %v3207_v39 }
0x1ae3   :  { %1449 = vrot.lane.b32.xlu0 %v1447_v40, %s2612_s0 }
0x1b55   :  { %v1450_v42 = vpop.permute.xlu0 %1449 }
0x1b56   :  { %2288 = vmatmul.mubr.msk.bf16.vlgmr.msra.gmra.mxu0 %vm572_vm11, %v1450_v42 }
0x1b57   :  { %2300 = vmatpush3.bf16.msra.mxu0 %v3073_v24  ;;  %2303 = vmatprep.mubr.msk.bf16.mxu0 %vm2614_vm10, %v2613_v37 }
0x1b58   :  { %2301 = vmatprep.subr.bf16.mxu0 %v2613_v37 }
0x1b5b   :  { %2302 = vmatpush3.bf16.msra.mxu0 %v3077_v15 }
0x1c16   :  { %v1488_v38 = vpop.f32.mrf.mxu0 }
0x1c17   :  { %v1494_v43 = vadd.f32 %v1488_v38, %v1177_v36 }
0x1c18   :  { %v2289_v16 = vpop.f32.mrf.mxu0 }
0x1c19   :  { %v2123_v44 = vmul.f32 -1.442695, %v1494_v43 }
0x1c1a   :  { %v1491_v45 = vpop.f32.mrf.mxu0 }
0x1c1b   :  { %2441 = vpow2.f32 %v2123_v44 }
0x1c1c   :  { %v2290_v46 = vpop.f32.mrf.mxu0  ;;  %2443 = vtanh.f32 %v1494_v43 }
0x1c28   :  { %v2442_v47 = vpop.eup %2441 }
0x1c29   :  { %v1498_v48 = vadd.f32 1.0, %v2442_v47  ;;  %v2444_v49 = vpop.eup %2443 }
0x1c2b   :  { %2445 = vrcp.f32 %v1498_v48 }
0x1c38   :  { %v2446_v50 = vpop.eup %2445 }
0x1c39   :  { %v1502_v51 = vsel %vm2710_vm9, %v2444_v49, %v2446_v50  ;;  %v1188_v49 = vadd.f32 %v3196_v9, %v3053_v58  ;;  %v1739_v9 = vpack.c.bf16 %v3151_v33, %v3086_v53 }
0x1c3a   :  { %1505 = vrot.lane.b32.xlu1 %v1502_v51, %s2608_s14  ;;  %v1503_v55 = vmul.f32 %v1502_v51, %v1440_v30 }
0x1cac   :  { %v1506_v52 = vpop.permute.xlu1 %1505 }
0x1cad   :  { %v1508_v54 = vmul.f32 %v1506_v52, %v1502_v51 }
0x1caf   :  { %1510 = vrot.lane.b32.xlu0 %v1508_v54, %s2612_s0 }
0x1d21   :  { %v1511_v35 = vpop.permute.xlu0 %1510 }
0x1d22   :  { %v1513_v21 = vadd.f32 %v1511_v35, %v1503_v55 }
0x1d24   :  { %2447 = vtanh.f32 %v1513_v21 }
0x1d31   :  { %v2448_v56 = vpop.eup %2447 }
0x1d32   :  { %1516 = vrot.lane.b32.xlu1 %v2448_v56, %s2608_s14 }
0x1da4   :  { %v1517_v59 = vpop.permute.xlu1 %1516 }
0x1da5   :  { %v3224_v57 = vmul.f32 %v1517_v59, %v1502_v51 }
0x1da7   :  { %v1520_v60 = vpack.c.bf16 %v3224_v57, %v3224_v57 }
0x1da9   :  { %1522 = vrot.lane.b32.xlu0 %v1520_v60, %s2612_s0 }
0x1e1b   :  { %v1523_v61 = vpop.permute.xlu0 %1522 }
0x1e1c   :  { %2296 = vmatmul.mubr.msk.bf16.vlgmr.msra.gmra.mxu1 %vm572_vm11, %v1523_v61 }
0x1e1d   :  { %2308 = vmatpush3.bf16.msra.mxu1 %v3073_v24  ;;  %2311 = vmatprep.mubr.msk.bf16.mxu1 %vm2614_vm10, %v2613_v37 }
0x1e1e   :  { %2309 = vmatprep.subr.bf16.mxu1 %v2613_v37 }
0x1e21   :  { %2310 = vmatpush3.bf16.msra.mxu1 %v3077_v15 }
0x1edc   :  { %v1561_v63 = vpop.f32.mrf.mxu1 }
0x1edd   :  { %v1567_v0 = vadd.f32 %v1561_v63, %v1180_v62 }
0x1ede   :  { %v2297_v1 = vpop.f32.mrf.mxu1 }
0x1edf   :  { %v2125_v2 = vmul.f32 -1.442695, %v1567_v0 }
0x1ee0   :  { %v1564_v5 = vpop.f32.mrf.mxu1 }
0x1ee1   :  { %2449 = vpow2.f32 %v2125_v2  ;;  %v2344_v5 = vld [vmem:[%s3365_s6] sm:$0xff]  }
0x1ee2   :  { %v2298_v6 = vpop.f32.mrf.mxu1  ;;  %2451 = vtanh.f32 %v1567_v0  ;;  %v2343_v0 = vld [vmem:[%s3365_s6 + $0x8] sm:$0xff]  }
0x1ee3   :  { %2315 = vmatprep.subr.bf16.mxu0 %v2343_v0 }
0x1eee   :  { %v2450_v7 = vpop.eup %2449 }
0x1eef   :  { %v1571_v8 = vadd.f32 1.0, %v2450_v7  ;;  %v2452_v24 = vpop.eup %2451 }
0x1ef1   :  { %2453 = vrcp.f32 %v1571_v8 }
0x1efe   :  { %v2454_v11 = vpop.eup %2453 }
0x1eff   :  { %v1575_v37 = vsel %vm2710_vm9, %v2452_v24, %v2454_v11 }
0x1f00   :  { %1578 = vrot.lane.b32.xlu1 %v1575_v37, %s2608_s14  ;;  %v1576_v12 = vmul.f32 %v1575_v37, %v1513_v21 }
0x1f72   :  { %v1579_v15 = vpop.permute.xlu1 %1578 }
0x1f73   :  { %v1581_v10 = vmul.f32 %v1579_v15, %v1575_v37 }
0x1f75   :  { %1583 = vrot.lane.b32.xlu0 %v1581_v10, %s2612_s0  ;;  %v2130_v10 = vld [vmem:[#allocation9] ss:$0 sm:$0xff] }
0x1fe7   :  { %v1584_v13 = vpop.permute.xlu0 %1583 }
0x1fe8   :  { %v1586_v14 = vadd.f32 %v1584_v13, %v1576_v12 }
0x1fea   :  { %2455 = vtanh.f32 %v1586_v14 }
0x1ff7   :  { %v2456_v17 = vpop.eup %2455 }
0x1ff8   :  { %1589 = vrot.lane.b32.xlu1 %v2456_v17, %s2608_s14 }
0x206a   :  { %v1590_v18 = vpop.permute.xlu1 %1589 }
0x206b   :  { %v1592_v22 = vmul.f32 %v1590_v18, %v1575_v37 }
0x206d   :  { %v1593_v23 = vpack.c.bf16 %v1592_v22, %v1592_v22  ;;  %v1741_v63 = vpack.c.bf16 %v1592_v22, %v3224_v57  ;;  %v1740_v57 = vpack.c.bf16 %v3207_v39, %v3179_v3 }
0x206f   :  { %1595 = vrot.lane.b32.xlu0 %v1593_v23, %s2612_s0 }
0x20e1   :  { %v1596_v41 = vpop.permute.xlu0 %1595 }
0x20e2   :  { %2304 = vmatmul.mubr.msk.bf16.vlgmr.msra.gmra.mxu0 %vm572_vm11, %v1596_v41 }
0x20e3   :  { %2316 = vmatpush3.bf16.msra.mxu0 %v2343_v0 }
0x20e4   :  { %2317 = vmatprep.subr.bf16.mxu0 %v2344_v5 }
0x20e7   :  { %2318 = vmatpush3.bf16.msra.mxu0 %v2344_v5 }
0x21a2   :  { %v1634_v4 = vpop.f32.mrf.mxu0 }
0x21a3   :  { %v1640_v26 = vadd.f32 %v1634_v4, %v1185_v25 }
0x21a4   :  { %v2305_v27 = vpop.f32.mrf.mxu0 }
0x21a5   :  { %v2127_v31 = vmul.f32 -1.442695, %v1640_v26 }
0x21a6   :  { %v1637_v29 = vpop.f32.mrf.mxu0 }
0x21a7   :  { %2457 = vpow2.f32 %v2127_v31 }
0x21a8   :  { %v2306_v32 = vpop.f32.mrf.mxu0  ;;  %2459 = vtanh.f32 %v1640_v26 }
0x21b4   :  { %v2458_v30 = vpop.eup %2457 }
0x21b5   :  { %v1644_v19 = vadd.f32 1.0, %v2458_v30  ;;  %v2460_v34 = vpop.eup %2459 }
0x21b7   :  { %2461 = vrcp.f32 %v1644_v19 }
0x21c4   :  { %v2462_v40 = vpop.eup %2461 }
0x21c5   :  { %v1648_v42 = vsel %vm2710_vm9, %v2460_v34, %v2462_v40 }
0x21c6   :  { %1651 = vrot.lane.b32.xlu1 %v1648_v42, %s2608_s14  ;;  %v1649_v38 = vmul.f32 %v1648_v42, %v1586_v14 }
0x2238   :  { %v1652_v36 = vpop.permute.xlu1 %1651 }
0x2239   :  { %v1654_v20 = vmul.f32 %v1652_v36, %v1648_v42 }
0x223b   :  { %1656 = vrot.lane.b32.xlu0 %v1654_v20, %s2612_s0 }
0x22ad   :  { %v1657_v43 = vpop.permute.xlu0 %1656 }
0x22ae   :  { %v1659_v16 = vadd.f32 %v1657_v43, %v1649_v38 }
0x22b0   :  { %2463 = vtanh.f32 %v1659_v16 }
0x22bd   :  { %v2464_v44 = vpop.eup %2463 }
0x22be   :  { %1662 = vrot.lane.b32.xlu1 %v2464_v44, %s2608_s14 }
0x2330   :  { %v1663_v45 = vpop.permute.xlu1 %1662 }
0x2331   :  { %v1665_v46 = vmul.f32 %v1663_v45, %v1648_v42 }
0x2333   :  { %v1666_v47 = vpack.c.bf16 %v1665_v46, %v1665_v46 }
0x2335   :  { %1668 = vrot.lane.b32.xlu0 %v1666_v47, %s2612_s0 }
0x23a7   :  { %v1669_v48 = vpop.permute.xlu0 %1668 }
0x23a8   :  { %2312 = vmatmul.mubr.msk.bf16.vlgmr.msra.gmra.mxu1 %vm572_vm11, %v1669_v48 }
0x2468   :  { %v1707_v50 = vpop.f32.mrf.mxu1 }
0x2469   :  { %v1713_v51 = vadd.f32 %v1707_v50, %v1188_v49 }
0x246a   :  { %v2313_v52 = vpop.f32.mrf.mxu1 }
0x246b   :  { %v2129_v54 = vmul.f32 -1.442695, %v1713_v51 }
0x246c   :  { %v1710_v55 = vpop.f32.mrf.mxu1 }
0x246d   :  { %2465 = vpow2.f32 %v2129_v54 }
0x246e   :  { %v2314_v35 = vpop.f32.mrf.mxu1  ;;  %2467 = vtanh.f32 %v1713_v51 }
0x247a   :  { %v2466_v21 = vpop.eup %2465 }
0x247b   :  { %v1717_v56 = vadd.f32 1.0, %v2466_v21  ;;  %v2468_v59 = vpop.eup %2467 }
0x247d   :  { %2469 = vrcp.f32 %v1717_v56 }
0x248a   :  { %v2470_v60 = vpop.eup %2469 }
0x248b   :  { %v1721_v61 = vsel %vm2710_vm9, %v2468_v59, %v2470_v60 }
0x248c   :  { %1724 = vrot.lane.b32.xlu1 %v1721_v61, %s2608_s14  ;;  %v1722_v28 = vmul.f32 %v1721_v61, %v1659_v16 }
0x24fe   :  { %v1725_v62 = vpop.permute.xlu1 %1724 }
0x24ff   :  { %v1727_v58 = vmul.f32 %v1725_v62, %v1721_v61 }
0x2501   :  { %1729 = vrot.lane.b32.xlu0 %v1727_v58, %s2612_s0 }
0x2505   :  { %1753 = vrot.lane.b32.xlu0 %v1739_v9, %s2612_s0 }
0x2509   :  { %1757 = vrot.lane.b32.xlu0 %v1741_v63, %s2612_s0 }
0x2573   :  { %v1730_v1 = vpop.permute.xlu0 %1729 }
0x2574   :  { %v1732_v2 = vadd.f32 %v1730_v1, %v1722_v28 }
0x2576   :  { %2471 = vtanh.f32 %v1732_v2 }
0x2577   :  { %v1754_v53 = vpop.permute.xlu0 %1753 }
0x2578   :  { %2319 = vmatprep.mubr.msk.bf16.mxu0 %vm572_vm11, %v1754_v53 }
0x257b   :  { %v1758_v11 = vpop.permute.xlu0 %1757 }
0x2583   :  { %v2472_v33 = vpop.eup %2471 }
0x2584   :  { %1735 = vrot.lane.b32.xlu1 %v2472_v33, %s2608_s14 }
0x2588   :  { %1755 = vrot.lane.b32.xlu1 %v1740_v57, %s2612_s0 }
0x25f6   :  { %v1736_v6 = vpop.permute.xlu1 %1735 }
0x25f7   :  { %v1738_v7 = vmul.f32 %v1736_v6, %v1721_v61 }
0x25f9   :  { %v1742_v8 = vpack.c.bf16 %v1738_v7, %v1665_v46 }
0x25fa   :  { %v1756_v24 = vpop.permute.xlu1 %1755 }
0x25fb   :  { %1759 = vrot.lane.b32.xlu1 %v1742_v8, %s2612_s0  ;;  %2320 = vmatmul.mubr.msk.bf16.vlgmr.msra.gmra.mxu0 %vm572_vm11, %v1756_v24 }
0x25fc   :  { %2323 = vmatprep.mubr.msk.bf16.mxu0 %vm572_vm11, %v1758_v11 }
0x266d   :  { %v1760_v37 = vpop.permute.xlu1 %1759 }
0x266e   :  { %2324 = vmatmul.mubr.msk.bf16.gmra.mxu0 %vm572_vm11, %v1760_v37 }
0x26bb   :  { %v2321_v15 = vpop.f32.mrf.mxu0 }
0x26bc   :  { %v1828_v13 = vadd.f32 %v2321_v15, %v2130_v10 }
0x26bd   :  { %v1819_v12 = vpop.f32.mrf.mxu0 }
0x26be   :  { %v1820_v3 = vadd.f32 %v2130_v10, %v1819_v12  ;;  %v1857_v41 = vsel %vm1850_vm12, %v1828_v13, -inf }
0x26bf   :  { %v2322_v39 = vpop.f32.mrf.mxu0 }
0x26c0   :  { %v1851_v14 = vsel %vm1850_vm12, %v1820_v3, -inf  ;;  %v1831_v22 = vadd.f32 %v2322_v39, %v2130_v10 }
0x26c1   :  { %v1822_v17 = vpop.f32.mrf.mxu0  ;;  %1852 = vmax.xlane.f32.xlu0 %v1851_v14 }
0x26c2   :  { %v1823_v18 = vadd.f32 %v2130_v10, %v1822_v17  ;;  %v1860_v25 = vsel %vm1850_vm12, %v1831_v22, -inf }
0x26c4   :  { %v1854_v23 = vsel %vm1850_vm12, %v1823_v18, -inf }
0x26c5   :  { %1855 = vmax.xlane.f32.xlu1 %v1854_v23  ;;  %1858 = vmax.xlane.f32.xlu0 %v1857_v41 }
0x26c9   :  { %1861 = vmax.xlane.f32.xlu0 %v1860_v25 }
0x272e   :  { %v2325_v4 = vpop.f32.mrf.mxu0 }
0x272f   :  { %v1844_v29 = vadd.f32 %v2325_v4, %v2130_v10 }
0x2730   :  { %v1835_v26 = vpop.f32.mrf.mxu0 }
0x2731   :  { %v1836_v27 = vadd.f32 %v2130_v10, %v1835_v26  ;;  %v1869_v40 = vsel %vm1850_vm12, %v1844_v29, -inf }
0x2732   :  { %v2326_v31 = vpop.f32.mrf.mxu0 }
0x2733   :  { %v1863_v32 = vsel %vm1850_vm12, %v1836_v27, -inf  ;;  %v1847_v34 = vadd.f32 %v2326_v31, %v2130_v10 }
0x2734   :  { %v1838_v30 = vpop.f32.mrf.mxu0  ;;  %1864 = vmax.xlane.f32.xlu1 %v1863_v32 }
0x2735   :  { %v1839_v19 = vadd.f32 %v2130_v10, %v1838_v30  ;;  %v1872_v36 = vsel %vm1850_vm12, %v1847_v34, -inf }
0x2737   :  { %v1866_v42 = vsel %vm1850_vm12, %v1839_v19, -inf }
0x2738   :  { %1870 = vmax.xlane.f32.xlu1 %v1869_v40  ;;  %1867 = vmax.xlane.f32.xlu0 %v1866_v42 }
0x273c   :  { %1873 = vmax.xlane.f32.xlu0 %v1872_v36 }
0x274a   :  { %v1853_v20 = vpop.xlane.xlu0 %1852 }
0x274b   :  { %v3287_v38 = vsub.f32 %v1820_v3, %v1853_v20 }
0x274d   :  { %v1883_v43 = vmul.f32 1.442695, %v3287_v38 }
0x274e   :  { %v1856_v16 = vpop.xlane.xlu1 %1855  ;;  %v1859_v44 = vpop.xlane.xlu0 %1858 }
0x274f   :  { %2473 = vpow2.f32 %v1883_v43  ;;  %v3290_v45 = vsub.f32 %v1823_v18, %v1856_v16  ;;  %v3292_v46 = vsub.f32 %v1828_v13, %v1859_v44 }
0x2751   :  { %v1885_v47 = vmul.f32 1.442695, %v3290_v45  ;;  %v1887_v48 = vmul.f32 1.442695, %v3292_v46 }
0x2752   :  { %v1862_v49 = vpop.xlane.xlu0 %1861 }
0x2753   :  { %2475 = vpow2.f32 %v1885_v47  ;;  %v3296_v50 = vsub.f32 %v1831_v22, %v1862_v49 }
0x2754   :  { %2477 = vpow2.f32 %v1887_v48 }
0x2755   :  { %v1889_v51 = vmul.f32 1.442695, %v3296_v50 }
0x2757   :  { %2479 = vpow2.f32 %v1889_v51 }
0x275c   :  { %v2474_v52 = vpop.eup %2473 }
0x275d   :  { %v1899_v54 = vsel %vm1850_vm12, %v2474_v52, 0.0 }
0x275e   :  { %1900 = vadd.xlane.f32.xlu1 %v1899_v54 }
0x2760   :  { %v2476_v55 = vpop.eup %2475 }
0x2761   :  { %v2478_v35 = vpop.eup %2477  ;;  %v1902_v21 = vsel %vm1850_vm12, %v2476_v55, 0.0 }
0x2762   :  { %1903 = vadd.xlane.f32.xlu0 %v1902_v21  ;;  %v1905_v56 = vsel %vm1850_vm12, %v2478_v35, 0.0 }
0x2763   :  { %1906 = vadd.xlane.f32.xlu1 %v1905_v56 }
0x2764   :  { %v2480_v59 = vpop.eup %2479 }
0x2765   :  { %v1908_v60 = vsel %vm1850_vm12, %v2480_v59, 0.0 }
0x2766   :  { %1909 = vadd.xlane.f32.xlu0 %v1908_v60 }
0x27bd   :  { %v1865_v61 = vpop.xlane.xlu1 %1864 }
0x27be   :  { %v3303_v62 = vsub.f32 %v1836_v27, %v1865_v61 }
0x27c0   :  { %v1891_v58 = vmul.f32 1.442695, %v3303_v62 }
0x27c1   :  { %v1871_v9 = vpop.xlane.xlu1 %1870  ;;  %v1868_v63 = vpop.xlane.xlu0 %1867 }
0x27c2   :  { %2481 = vpow2.f32 %v1891_v58  ;;  %v3306_v0 = vsub.f32 %v1844_v29, %v1871_v9  ;;  %v3308_v28 = vsub.f32 %v1839_v19, %v1868_v63 }
0x27c4   :  { %v1895_v1 = vmul.f32 1.442695, %v3306_v0  ;;  %v1893_v2 = vmul.f32 1.442695, %v3308_v28 }
0x27c5   :  { %v1874_v5 = vpop.xlane.xlu0 %1873 }
0x27c6   :  { %2483 = vpow2.f32 %v1895_v1  ;;  %v3312_v53 = vsub.f32 %v1847_v34, %v1874_v5 }
0x27c7   :  { %2485 = vpow2.f32 %v1893_v2 }
0x27c8   :  { %v1897_v33 = vmul.f32 1.442695, %v3312_v53 }
0x27ca   :  { %2487 = vpow2.f32 %v1897_v33 }
0x27cf   :  { %v2482_v57 = vpop.eup %2481 }
0x27d0   :  { %v1911_v6 = vsel %vm1850_vm12, %v2482_v57, 0.0 }
0x27d1   :  { %1912 = vadd.xlane.f32.xlu1 %v1911_v6 }
0x27d3   :  { %v2484_v7 = vpop.eup %2483 }
0x27d4   :  { %v2486_v8 = vpop.eup %2485  ;;  %v1917_v24 = vsel %vm1850_vm12, %v2484_v7, 0.0 }
0x27d5   :  { %1918 = vadd.xlane.f32.xlu1 %v1917_v24  ;;  %v1914_v11 = vsel %vm1850_vm12, %v2486_v8, 0.0 }
0x27d6   :  { %1915 = vadd.xlane.f32.xlu0 %v1914_v11 }
0x27d7   :  { %v2488_v37 = vpop.eup %2487 }
0x27d8   :  { %v1920_v15 = vsel %vm1850_vm12, %v2488_v37, 0.0 }
0x27da   :  { %1921 = vadd.xlane.f32.xlu0 %v1920_v15 }
0x27e7   :  { %v1901_v10 = vpop.xlane.xlu1 %1900 }
0x27e8   :  { %2489 = vlog2.f32 %v1901_v10 }
0x27eb   :  { %v1904_v12 = vpop.xlane.xlu0 %1903 }
0x27ec   :  { %v1907_v3 = vpop.xlane.xlu1 %1906  ;;  %2491 = vlog2.f32 %v1904_v12 }
0x27ed   :  { %2493 = vlog2.f32 %v1907_v3 }
0x27ef   :  { %v1910_v39 = vpop.xlane.xlu0 %1909 }
0x27f0   :  { %2495 = vlog2.f32 %v1910_v39 }
0x27f5   :  { %v2490_v13 = vpop.eup %2489 }
0x27f6   :  { %v1924_v14 = vmul.f32 0.6931472, %v2490_v13 }
0x27f8   :  { %v1939_v17 = vsub.f32 %v3287_v38, %v1924_v14 }
0x27f9   :  { %v2492_v18 = vpop.eup %2491 }
0x27fa   :  { %v2494_v22 = vpop.eup %2493  ;;  %1947 = vst.msk [vmem:[%s3367_s8] sm:$0xff] %vm1850_vm12, %v1939_v17  ;;  %v1926_v23 = vmul.f32 0.6931472, %v2492_v18 }
0x27fb   :  { %v1928_v41 = vmul.f32 0.6931472, %v2494_v22 }
0x27fc   :  { %v1940_v25 = vsub.f32 %v3290_v45, %v1926_v23 }
0x27fd   :  { %v2496_v4 = vpop.eup %2495  ;;  %v1941_v26 = vsub.f32 %v3292_v46, %v1928_v41 }
0x27fe   :  { %1948 = vst.msk [vmem:[%s3367_s8 + $0x8] sm:$0xff] %vm1850_vm12, %v1940_v25  ;;  %v1930_v27 = vmul.f32 0.6931472, %v2496_v4 }
0x27ff   :  { %1949 = vst.msk [vmem:[%s3367_s8 + $0x10] sm:$0xff] %vm1850_vm12, %v1941_v26 }
0x2800   :  { %v1942_v31 = vsub.f32 %v3296_v50, %v1930_v27 }
0x2802   :  { %1950 = vst.msk [vmem:[%s3367_s8 + $0x18] sm:$0xff] %vm1850_vm12, %v1942_v31 }
0x285a   :  { %v1913_v29 = vpop.xlane.xlu1 %1912 }
0x285b   :  { %2497 = vlog2.f32 %v1913_v29 }
0x285e   :  { %v1919_v32 = vpop.xlane.xlu1 %1918 }
0x285f   :  { %2499 = vlog2.f32 %v1919_v32  ;;  %v1916_v30 = vpop.xlane.xlu0 %1915 }
0x2860   :  { %2501 = vlog2.f32 %v1916_v30 }
0x2863   :  { %v1922_v19 = vpop.xlane.xlu0 %1921 }
0x2864   :  { %2503 = vlog2.f32 %v1922_v19 }
0x2868   :  { %v2498_v34 = vpop.eup %2497 }
0x2869   :  { %v1932_v40 = vmul.f32 0.6931472, %v2498_v34 }
0x286b   :  { %v1943_v42 = vsub.f32 %v3303_v62, %v1932_v40 }
0x286c   :  { %v2500_v36 = vpop.eup %2499 }
0x286d   :  { %v2502_v20 = vpop.eup %2501  ;;  %1951 = vst.msk [vmem:[%s3367_s8 + $0x20] sm:$0xff] %vm1850_vm12, %v1943_v42  ;;  %v1936_v38 = vmul.f32 0.6931472, %v2500_v36 }
0x286e   :  { %v1934_v43 = vmul.f32 0.6931472, %v2502_v20 }
0x286f   :  { %v1945_v16 = vsub.f32 %v3306_v0, %v1936_v38 }
0x2870   :  { %v1944_v44 = vsub.f32 %v3308_v28, %v1934_v43 }
0x2871   :  { %v2504_v45 = vpop.eup %2503  ;;  %1953 = vst.msk [vmem:[%s3367_s8 + $0x30] sm:$0xff] %vm1850_vm12, %v1945_v16 }
0x2872   :  { %1952 = vst.msk [vmem:[%s3367_s8 + $0x28] sm:$0xff] %vm1850_vm12, %v1944_v44  ;;  %v1938_v46 = vmul.f32 0.6931472, %v2504_v45 }
0x2874   :  { %v1946_v47 = vsub.f32 %v3312_v53, %v1938_v46 }
0x2876   :  { %1954 = vst.msk [vmem:[%s3367_s8 + $0x38] sm:$0xff] %vm1850_vm12, %v1946_v47 }
0x2877   :  { %1959 = vsyncpa [#allocation5], 1 }
0x2878   :  { %1960 = vsyncpa [#allocation7], 1 }
0x2879   :  { %1961 = vsyncpa [#allocation10], 1 }

</bundles_post_ra>
